<compile_context>
chip_gen: v6e
topology: v6e:2x2x1
jax: 0.10.0
libtpu: 0.0.40
codegen_flags: <defaults>
</compile_context>

<pallas_src>
import functools

import jax
import jax.numpy as jnp
from jax.experimental import pallas as pl
from jax.experimental.pallas import tpu as pltpu


_VMEM_LIMIT = 32 * 1024 * 1024  # safe scoped-VMEM cap on v5e/v6e/v7x for these tile sizes


def _round_up(x, m):
    return (x + m - 1) // m * m


# ------------------------------ Pallas kernels ------------------------------

def _matmul_bias_kernel(x_ref, w_ref, b_ref, o_ref, *, act):
    # (tm, K) @ (K, tn) bf16 on the MXU, f32 accumulation; bias (and optional SiLU)
    # fused into the epilogue so no separate elementwise pass touches HBM.
    acc = jnp.dot(x_ref[...], w_ref[...], preferred_element_type=jnp.float32)
    acc = acc + b_ref[...]
    if act == "silu":
        acc = acc * jax.nn.sigmoid(acc)
    o_ref[...] = acc.astype(o_ref.dtype)


def _matmul_bias_residual_kernel(x_ref, w_ref, b_ref, r_ref, o_ref, *, act):
    # Same GEMM but with a fused residual add; the SiLU pre-activation of the *next*
    # conv is also applied here so the conv never recomputes it per tap.
    acc = jnp.dot(x_ref[...], w_ref[...], preferred_element_type=jnp.float32)
    acc = acc + b_ref[...] + r_ref[...].astype(jnp.float32)
    if act == "silu":
        acc = acc * jax.nn.sigmoid(acc)
    o_ref[...] = acc.astype(o_ref.dtype)


def _conv3x3_kernel(x_ref, w_ref, be_ref, o_ref, xs_ref, acc_ref, *, H, W):
    # Direct 3x3 "same" convolution for one padded image (grid over batch).
    #   x_ref : (1, H+2, W+2, Cin)  bf16   padded input image
    #   w_ref : (9, Cin, Cout)      bf16   tap-major weights
    #   be_ref: (1, 1, Cout)        f32    bias (+ per-image timestep embedding)
    #   o_ref : (1, H*W, Cout)      bf16   flattened-token, lane-dense output
    #   xs_ref: (H+2, W+2, Cin)     f32    scratch: unpacked copy of the input so the
    #                                      nine shifted window reads are plain f32
    #                                      sublane-offset loads (no bf16 repacking)
    #   acc_ref: (H*W, Cout)        f32    VMEM accumulator over the 9 taps
    # No im2col tensor ever touches HBM: every tap is read out of VMEM.
    cin = x_ref.shape[3]
    xs_ref[...] = x_ref[0].astype(jnp.float32)
    acc_ref[...] = jnp.zeros_like(acc_ref)
    for di in range(3):
        for dj in range(3):
            patch = xs_ref[di:di + H, dj:dj + W, :]
            patch = patch.reshape(H * W, cin).astype(jnp.bfloat16)
            acc_ref[...] += jnp.dot(patch, w_ref[di * 3 + dj],
                                    preferred_element_type=jnp.float32)
    o_ref[0] = (acc_ref[...] + be_ref[0]).astype(o_ref.dtype)


def _attention_kernel(q_ref, k_ref, v_ref, o_ref, *, scale):
    # q_ref: (1, tq, D), k_ref / v_ref: (1, L, D), all bf16.
    q = q_ref[...]
    k = k_ref[...]
    v = v_ref[...]
    s = jnp.einsum("bqd,bkd->bqk", q, k,
                   preferred_element_type=jnp.float32) * scale
    m = jnp.max(s, axis=-1, keepdims=True)
    p = jnp.exp(s - m)
    l = jnp.sum(p, axis=-1, keepdims=True)
    o = jnp.einsum("bqk,bkd->bqd", p.astype(v.dtype), v,
                   preferred_element_type=jnp.float32)
    # Normalize the (tq, D) output with an EUP approx-reciprocal instead of dividing
    # the (tq, L) probability matrix on the VPU.
    o_ref[...] = (o * pl.reciprocal(l, approx=True)).astype(o_ref.dtype)
    # TODO(synk): for long contexts, tile K/V over a grid axis with online softmax
    # (flash pattern) so the score matrix never has to fit in VMEM.


# ------------------------------ pallas_call wrappers ------------------------------

def pallas_matmul_bias(x, w, b, residual=None, act=None, out_dtype=jnp.bfloat16):
    """Tiled bf16 GEMM + bias with optional fused residual-add / SiLU epilogue.

    Grid = (M tiles, N tiles), both 'parallel' (megacore sharding).  K stays whole per
    block (K <= model_ch here).
    TODO(synk): add a K grid axis ('arbitrary') with an f32 VMEM accumulator once K
    grows beyond a few thousand.
    """
    M, K = x.shape
    N = w.shape[1]
    tm = 256 if M >= 256 else _round_up(M, 8)
    mp = _round_up(M, tm)
    tn = 128
    npad = _round_up(N, tn)          # lane-dense output tiles (pad narrow N)

    x = x.astype(jnp.bfloat16)
    w = w.astype(jnp.bfloat16)
    b = b.astype(jnp.float32).reshape(1, N)
    if mp != M:
        x = jnp.pad(x, ((0, mp - M), (0, 0)))
    if npad != N:
        w = jnp.pad(w, ((0, 0), (0, npad - N)))
        b = jnp.pad(b, ((0, 0), (0, npad - N)))

    in_specs = [
        pl.BlockSpec((tm, K), lambda i, j: (i, 0)),
        pl.BlockSpec((K, tn), lambda i, j: (0, j)),
        pl.BlockSpec((1, tn), lambda i, j: (0, j)),   # bias pinned across M tiles
    ]
    args = [x, w, b]
    if residual is not None:
        r = residual.astype(jnp.bfloat16)
        if mp != M:
            r = jnp.pad(r, ((0, mp - M), (0, 0)))
        if npad != N:
            r = jnp.pad(r, ((0, 0), (0, npad - N)))
        in_specs.append(pl.BlockSpec((tm, tn), lambda i, j: (i, j)))
        args.append(r)
        kernel = functools.partial(_matmul_bias_residual_kernel, act=act)
    else:
        kernel = functools.partial(_matmul_bias_kernel, act=act)

    out = pl.pallas_call(
        kernel,
        out_shape=jax.ShapeDtypeStruct((mp, npad), out_dtype),
        grid=(mp // tm, npad // tn),
        in_specs=in_specs,
        out_specs=pl.BlockSpec((tm, tn), lambda i, j: (i, j)),
        compiler_params=pltpu.CompilerParams(
            dimension_semantics=("parallel", "parallel"),
            vmem_limit_bytes=_VMEM_LIMIT),
    )(*args)
    return out[:M, :N]


def pallas_conv3x3(x_nhwc, w, be, out_dtype=jnp.bfloat16):
    """3x3 'same' conv, NHWC, as a direct Pallas kernel (no HBM im2col).

    Returns flattened tokens (B, H*W, Cout).  Bias (optionally combined with a
    per-image timestep embedding) is fused into the epilogue; output channels are
    padded to a multiple of 128 inside the kernel (lane-dense, unmasked stores) and
    sliced back here.
    """
    B, H, W, cin = x_nhwc.shape
    cout = w.shape[-1]
    cin_p = _round_up(cin, 128)      # lane-dense loads / full-tile in-kernel flatten
    cout_p = _round_up(cout, 128)    # lane-dense stores for narrow channel counts

    x = x_nhwc.astype(jnp.bfloat16)
    w = w.astype(jnp.bfloat16)
    be = be.astype(jnp.float32)
    if cin_p != cin:
        x = jnp.pad(x, ((0, 0), (0, 0), (0, 0), (0, cin_p - cin)))
        w = jnp.pad(w, ((0, 0), (0, 0), (0, cin_p - cin), (0, 0)))
    if cout_p != cout:
        w = jnp.pad(w, ((0, 0), (0, 0), (0, 0), (0, cout_p - cout)))
        be = jnp.pad(be, ((0, 0), (0, cout_p - cout)))
    xp = jnp.pad(x, ((0, 0), (1, 1), (1, 1), (0, 0)))      # spatial "same" padding
    w9 = w.reshape(9, cin_p, cout_p)
    be3 = be.reshape(be.shape[0], 1, cout_p)
    if be3.shape[0] == B:
        be_index = lambda b: (b, 0, 0)    # per-image bias + timestep embedding
    else:
        be_index = lambda b: (0, 0, 0)    # shared bias

    out = pl.pallas_call(
        functools.partial(_conv3x3_kernel, H=H, W=W),
        out_shape=jax.ShapeDtypeStruct((B, H * W, cout_p), out_dtype),
        grid=(B,),
        in_specs=[
            pl.BlockSpec((1, H + 2, W + 2, cin_p), lambda b: (b, 0, 0, 0)),
            pl.BlockSpec((9, cin_p, cout_p), lambda b: (0, 0, 0)),
            pl.BlockSpec((1, 1, cout_p), be_index),
        ],
        out_specs=pl.BlockSpec((1, H * W, cout_p), lambda b: (b, 0, 0)),
        scratch_shapes=[
            pltpu.VMEM((H + 2, W + 2, cin_p), jnp.float32),
            pltpu.VMEM((H * W, cout_p), jnp.float32),
        ],
        compiler_params=pltpu.CompilerParams(
            dimension_semantics=("parallel",),
            vmem_limit_bytes=_VMEM_LIMIT),
    )(xp, w9, be3)
    # TODO(synk): for large resolutions, additionally tile H (with a 1-row halo) so
    # the per-image block stays within the v7x 64 MiB VMEM budget.
    return out[:, :, :cout]


def pallas_attention(q, k, v):
    """Single-head cross-attention; grid over (batch, query tiles), both 'parallel'."""
    B, N, D = q.shape
    L = k.shape[1]
    tq = 256 if N >= 256 else _round_up(N, 8)
    npad = _round_up(N, tq)
    if npad != N:
        q = jnp.pad(q, ((0, 0), (0, npad - N), (0, 0)))
    out = pl.pallas_call(
        functools.partial(_attention_kernel, scale=1.0 / float(D) ** 0.5),
        out_shape=jax.ShapeDtypeStruct((B, npad, D), jnp.bfloat16),
        grid=(B, npad // tq),
        in_specs=[
            pl.BlockSpec((1, tq, D), lambda b, i: (b, i, 0)),
            pl.BlockSpec((1, L, D), lambda b, i: (b, 0, 0)),
            pl.BlockSpec((1, L, D), lambda b, i: (b, 0, 0)),
        ],
        out_specs=pl.BlockSpec((1, tq, D), lambda b, i: (b, i, 0)),
        compiler_params=pltpu.CompilerParams(
            dimension_semantics=("parallel", "parallel"),
            vmem_limit_bytes=_VMEM_LIMIT),
    )(q.astype(jnp.bfloat16), k.astype(jnp.bfloat16), v.astype(jnp.bfloat16))
    return out[:, :N, :]


# ------------------------------ synthetic inner model ------------------------------

def timestep_embedding(t, dim, max_period=10000.0):
    half = dim // 2
    freqs = jnp.exp(-jnp.log(max_period) * jnp.arange(half, dtype=jnp.float32) / half)
    args = t.astype(jnp.float32)[:, None] * freqs[None, :]
    return jnp.concatenate([jnp.cos(args), jnp.sin(args)], axis=-1)


def init_params(key, *, in_ch, out_ch, model_ch, ctx_dim, adm_dim, temb_dim):
    def dense(k, fi, fo):
        return {"w": jax.random.normal(k, (fi, fo), jnp.float32) / jnp.sqrt(float(fi)),
                "b": jnp.zeros((fo,), jnp.float32)}

    def conv(k, ci, co):
        return {"w": jax.random.normal(k, (3, 3, ci, co), jnp.float32) / jnp.sqrt(9.0 * ci),
                "b": jnp.zeros((co,), jnp.float32)}

    ks = jax.random.split(key, 8)
    return {
        "time": dense(ks[0], temb_dim, model_ch),
        "label": dense(ks[1], adm_dim, model_ch),
        "conv_in": conv(ks[2], in_ch, model_ch),
        "q": dense(ks[3], model_ch, model_ch),
        "k": dense(ks[4], ctx_dim, model_ch),
        "v": dense(ks[5], ctx_dim, model_ch),
        "proj_out": dense(ks[6], model_ch, model_ch),
        "conv_out": conv(ks[7], model_ch, out_ch),
    }


def diffusion_model_apply(params, x, *, timesteps, context=None, y=None, **kwargs):
    """Representative half-precision UNet core (the wrapper's diffusion_model is opaque)."""
    # TODO(synk): extra UNet kwargs (e.g. num_video_frames) are accepted but unused.
    del kwargs
    B = x.shape[0]
    H, W = x.shape[2], x.shape[3]
    x_nhwc = jnp.transpose(x, (0, 2, 3, 1))
    model_ch = params["time"]["w"].shape[1]
    temb_dim = params["time"]["w"].shape[0]

    # Timestep / label embedding MLPs: tiny (B x temb_dim) GEMMs, left to XLA —
    # a Pallas launch here would be pure dispatch overhead.
    temb = timestep_embedding(timesteps, temb_dim)
    emb = temb @ params["time"]["w"].astype(jnp.float32) + params["time"]["b"].astype(jnp.float32)
    emb = jax.nn.silu(emb)
    if y is not None:
        lab = (y.astype(jnp.float32) @ params["label"]["w"].astype(jnp.float32)
               + params["label"]["b"].astype(jnp.float32))
        emb = emb + jax.nn.silu(lab)                           # (B, model_ch) f32

    # conv_in: bias + timestep-embedding broadcast fused into the conv epilogue.
    be_in = params["conv_in"]["b"].astype(jnp.float32)[None, :] + emb
    h = pallas_conv3x3(x_nhwc, params["conv_in"]["w"], be_in)  # (B, H*W, Cm) bf16

    # Cross-attention block (single head).
    hw = H * W
    hf = h.reshape(B * hw, model_ch)
    q = pallas_matmul_bias(hf, params["q"]["w"], params["q"]["b"])
    if context is None:
        context = jnp.zeros((B, 1, params["k"]["w"].shape[0]), jnp.bfloat16)
    L, dctx = context.shape[1], context.shape[2]
    ctx2d = context.reshape(B * L, dctx)
    kproj = pallas_matmul_bias(ctx2d, params["k"]["w"], params["k"]["b"])
    vproj = pallas_matmul_bias(ctx2d, params["v"]["w"], params["v"]["b"])
    attn = pallas_attention(q.reshape(B, hw, model_ch),
                            kproj.reshape(B, L, model_ch),
                            vproj.reshape(B, L, model_ch))
    # Output projection with the residual add AND the SiLU pre-activation of conv_out
    # fused into the GEMM epilogue (no standalone elementwise kernels, and the conv
    # never recomputes SiLU per tap).
    h_act = pallas_matmul_bias(attn.reshape(B * hw, model_ch),
                               params["proj_out"]["w"], params["proj_out"]["b"],
                               residual=hf, act="silu")
    # TODO(synk): GroupNorm layers of the real UNet res/attention blocks are omitted.

    # conv_out: the narrow out_ch is padded to 128 lanes inside the kernel
    # (lane-dense stores) and sliced back afterwards.
    out_ch = params["conv_out"]["w"].shape[-1]
    out = pallas_conv3x3(h_act.reshape(B, H, W, model_ch),
                         params["conv_out"]["w"],
                         params["conv_out"]["b"].astype(jnp.float32)[None, :])
    out = out.reshape(B, H, W, out_ch)
    return jnp.transpose(out, (0, 3, 1, 2))                    # back to NCHW, bf16


# ------------------------------ OpenAIHalfWrapper equivalent ------------------------------

class OpenAIHalfWrapperPallas:
    """JAX/Pallas analogue of OpenAIHalfWrapper.

    forward(x, t, c): concat c['concat'] on the channel axis, cast inputs and model
    to half precision (bf16 on TPU), run the diffusion model, return float32.
    """

    def __init__(self, diffusion_params):
        # mirrors `self.diffusion_model = self.diffusion_model.half()`
        # TODO(synk): PyTorch .half() is fp16; bf16 is the TPU-native half type.
        self.params = jax.tree_util.tree_map(
            lambda p: p.astype(jnp.bfloat16), diffusion_params)

    def __call__(self, x, t, c, **kwargs):
        concat = c.get("concat", None)
        if concat is not None and concat.size > 0:
            x = jnp.concatenate([x, concat.astype(x.dtype)], axis=1)
        context = c.get("crossattn", None)
        y = c.get("vector", None)
        x = x.astype(jnp.bfloat16)
        t = t.astype(jnp.bfloat16)
        if context is not None:
            context = context.astype(jnp.bfloat16)
        if y is not None:
            y = y.astype(jnp.bfloat16)
        out = diffusion_model_apply(self.params, x, timesteps=t,
                                    context=context, y=y, **kwargs)
        return out.astype(jnp.float32)        # == out.float()


# ------------------------------ demo ------------------------------

if __name__ == "__main__":
    key = jax.random.PRNGKey(0)
    kp, kx, kcat, kctx, kvec = jax.random.split(key, 5)

    B, C, H, W = 2, 4, 16, 16
    Ccat = 4                      # channels of c['concat']
    L, Dctx, Dadm = 8, 32, 32     # crossattn tokens / dims, adm 'vector' dim
    Cm = 128                      # model width (lane-dense)

    params = init_params(kp, in_ch=C + Ccat, out_ch=C, model_ch=Cm,
                         ctx_dim=Dctx, adm_dim=Dadm, temb_dim=32)

    x = jax.random.normal(kx, (B, C, H, W), jnp.float32)          # noisy latent (NCHW)
    concat = jax.random.normal(kcat, (B, Ccat, H, W), jnp.float32)  # 'concat' cond
    t = jnp.array([10.0, 500.0], jnp.float32)                     # timesteps
    context = jax.random.normal(kctx, (B, L, Dctx), jnp.float32)   # crossattn context
    vector = jax.random.normal(kvec, (B, Dadm), jnp.float32)       # adm 'vector' cond

    c = {"concat": concat, "crossattn": context, "vector": vector}

    wrapper = OpenAIHalfWrapperPallas(params)
    out = jax.block_until_ready(wrapper(x, t, c))

    assert out.shape == (B, C, H, W), out.shape
    assert out.dtype == jnp.float32, out.dtype
    assert bool(jnp.all(jnp.isfinite(out)))
    print("KERNEL_OK")
</pallas_src>

<mosaic_0001>
module attributes {stable_mosaic.version = 11 : i64} {
  func.func @_conv3x3_kernel(%arg0: i32, %arg1: memref<1x18x18x128xbf16, #tpu.memory_space<vmem>>, %arg2: memref<9x128x128xbf16, #tpu.memory_space<vmem>>, %arg3: memref<1x1x128xf32, #tpu.memory_space<vmem>>, %arg4: memref<1x256x128xbf16, #tpu.memory_space<vmem>>, %arg5: memref<18x18x128xf32, #tpu.memory_space<vmem>>, %arg6: memref<256x128xf32, #tpu.memory_space<vmem>>) attributes {dimension_semantics = [#tpu.dimension_semantics<parallel>], iteration_bounds = array<i64: 2>, scalar_prefetch = 0 : i64, scratch_operands = 2 : i64, tpu.core_type = #tpu.core_type<tc>, window_params = [{transform_indices = @transform_0, window_bounds = array<i64: 1, 18, 18, 128>}, {pipeline_mode = #tpu.pipeline_mode<synchronous>, transform_indices = @transform_1, window_bounds = array<i64: 9, 128, 128>}, {transform_indices = @transform_2, window_bounds = array<i64: 1, 1, 128>}, {transform_indices = @transform_3, window_bounds = array<i64: 1, 256, 128>}]} {
    %c0 = arith.constant 0 : index
    %c0_0 = arith.constant 0 : index
    %c0_1 = arith.constant 0 : index
    %c0_2 = arith.constant 0 : index
    %0 = vector.load %arg1[%c0, %c0_0, %c0_1, %c0_2] : memref<1x18x18x128xbf16, #tpu.memory_space<vmem>>, vector<1x18x18x128xbf16>
    %1 = vector.shape_cast %0 : vector<1x18x18x128xbf16> to vector<18x18x128xbf16>
    %2 = arith.extf %1 : vector<18x18x128xbf16> to vector<18x18x128xf32>
    %c0_3 = arith.constant 0 : index
    %c0_4 = arith.constant 0 : index
    %c0_5 = arith.constant 0 : index
    %3 = vector.load %arg5[%c0_3, %c0_4, %c0_5] : memref<18x18x128xf32, #tpu.memory_space<vmem>>, vector<18x18x128xf32>
    tpu.vector_store %arg5[%c0_3, %c0_4, %c0_5], %2 {strides = array<i32>} : memref<18x18x128xf32, #tpu.memory_space<vmem>>, vector<18x18x128xf32>,
    %cst = arith.constant 0.000000e+00 : f32
    %4 = vector.broadcast %cst : f32 to vector<256x128xf32>
    %c0_6 = arith.constant 0 : index
    %c0_7 = arith.constant 0 : index
    %5 = vector.load %arg6[%c0_6, %c0_7] : memref<256x128xf32, #tpu.memory_space<vmem>>, vector<256x128xf32>
    tpu.vector_store %arg6[%c0_6, %c0_7], %4 {strides = array<i32>} : memref<256x128xf32, #tpu.memory_space<vmem>>, vector<256x128xf32>,
    %c0_8 = arith.constant 0 : index
    %c0_9 = arith.constant 0 : index
    %c0_10 = arith.constant 0 : index
    %6 = vector.load %arg5[%c0_8, %c0_9, %c0_10] : memref<18x18x128xf32, #tpu.memory_space<vmem>>, vector<16x16x128xf32>
    %7 = vector.shape_cast %6 : vector<16x16x128xf32> to vector<256x128xf32>
    %8 = arith.truncf %7 : vector<256x128xf32> to vector<256x128xbf16>
    %c0_11 = arith.constant 0 : index
    %c0_12 = arith.constant 0 : index
    %9 = vector.load %arg6[%c0_11, %c0_12] : memref<256x128xf32, #tpu.memory_space<vmem>>, vector<256x128xf32>
    %c0_13 = arith.constant 0 : index
    %c0_14 = arith.constant 0 : index
    %c0_15 = arith.constant 0 : index
    %10 = vector.load %arg2[%c0_13, %c0_14, %c0_15] : memref<9x128x128xbf16, #tpu.memory_space<vmem>>, vector<1x128x128xbf16>
    %11 = vector.shape_cast %10 : vector<1x128x128xbf16> to vector<128x128xbf16>
    %cst_16 = arith.constant dense<0.000000e+00> : vector<256x128xf32>
    %12 = tpu.matmul %8, %11, %cst_16 {dimension_numbers = #tpu.dot_dimension_numbers<[1], [0], [0], [1], [0, 0, 1, 1], [], []>} : vector<256x128xbf16>, vector<128x128xbf16>, vector<256x128xf32> -> vector<256x128xf32>
    %13 = arith.addf %9, %12 : vector<256x128xf32>
    %c0_17 = arith.constant 0 : index
    %c0_18 = arith.constant 0 : index
    %14 = vector.load %arg6[%c0_17, %c0_18] : memref<256x128xf32, #tpu.memory_space<vmem>>, vector<256x128xf32>
    tpu.vector_store %arg6[%c0_17, %c0_18], %13 {strides = array<i32>} : memref<256x128xf32, #tpu.memory_space<vmem>>, vector<256x128xf32>,
    %c0_19 = arith.constant 0 : index
    %c1 = arith.constant 1 : index
    %c0_20 = arith.constant 0 : index
    %15 = vector.load %arg5[%c0_19, %c1, %c0_20] : memref<18x18x128xf32, #tpu.memory_space<vmem>>, vector<16x16x128xf32>
    %16 = vector.shape_cast %15 : vector<16x16x128xf32> to vector<256x128xf32>
    %17 = arith.truncf %16 : vector<256x128xf32> to vector<256x128xbf16>
    %c0_21 = arith.constant 0 : index
    %c0_22 = arith.constant 0 : index
    %18 = vector.load %arg6[%c0_21, %c0_22] : memref<256x128xf32, #tpu.memory_space<vmem>>, vector<256x128xf32>
    %c1_23 = arith.constant 1 : index
    %c0_24 = arith.constant 0 : index
    %c0_25 = arith.constant 0 : index
    %19 = vector.load %arg2[%c1_23, %c0_24, %c0_25] : memref<9x128x128xbf16, #tpu.memory_space<vmem>>, vector<1x128x128xbf16>
    %20 = vector.shape_cast %19 : vector<1x128x128xbf16> to vector<128x128xbf16>
    %cst_26 = arith.constant dense<0.000000e+00> : vector<256x128xf32>
    %21 = tpu.matmul %17, %20, %cst_26 {dimension_numbers = #tpu.dot_dimension_numbers<[1], [0], [0], [1], [0, 0, 1, 1], [], []>} : vector<256x128xbf16>, vector<128x128xbf16>, vector<256x128xf32> -> vector<256x128xf32>
    %22 = arith.addf %18, %21 : vector<256x128xf32>
    %c0_27 = arith.constant 0 : index
    %c0_28 = arith.constant 0 : index
    %23 = vector.load %arg6[%c0_27, %c0_28] : memref<256x128xf32, #tpu.memory_space<vmem>>, vector<256x128xf32>
    tpu.vector_store %arg6[%c0_27, %c0_28], %22 {strides = array<i32>} : memref<256x128xf32, #tpu.memory_space<vmem>>, vector<256x128xf32>,
    %c0_29 = arith.constant 0 : index
    %c2 = arith.constant 2 : index
    %c0_30 = arith.constant 0 : index
    %24 = vector.load %arg5[%c0_29, %c2, %c0_30] : memref<18x18x128xf32, #tpu.memory_space<vmem>>, vector<16x16x128xf32>
    %25 = vector.shape_cast %24 : vector<16x16x128xf32> to vector<256x128xf32>
    %26 = arith.truncf %25 : vector<256x128xf32> to vector<256x128xbf16>
    %c0_31 = arith.constant 0 : index
    %c0_32 = arith.constant 0 : index
    %27 = vector.load %arg6[%c0_31, %c0_32] : memref<256x128xf32, #tpu.memory_space<vmem>>, vector<256x128xf32>
    %c2_33 = arith.constant 2 : index
    %c0_34 = arith.constant 0 : index
    %c0_35 = arith.constant 0 : index
    %28 = vector.load %arg2[%c2_33, %c0_34, %c0_35] : memref<9x128x128xbf16, #tpu.memory_space<vmem>>, vector<1x128x128xbf16>
    %29 = vector.shape_cast %28 : vector<1x128x128xbf16> to vector<128x128xbf16>
    %cst_36 = arith.constant dense<0.000000e+00> : vector<256x128xf32>
    %30 = tpu.matmul %26, %29, %cst_36 {dimension_numbers = #tpu.dot_dimension_numbers<[1], [0], [0], [1], [0, 0, 1, 1], [], []>} : vector<256x128xbf16>, vector<128x128xbf16>, vector<256x128xf32> -> vector<256x128xf32>
    %31 = arith.addf %27, %30 : vector<256x128xf32>
    %c0_37 = arith.constant 0 : index
    %c0_38 = arith.constant 0 : index
    %32 = vector.load %arg6[%c0_37, %c0_38] : memref<256x128xf32, #tpu.memory_space<vmem>>, vector<256x128xf32>
    tpu.vector_store %arg6[%c0_37, %c0_38], %31 {strides = array<i32>} : memref<256x128xf32, #tpu.memory_space<vmem>>, vector<256x128xf32>,
    %c1_39 = arith.constant 1 : index
    %c0_40 = arith.constant 0 : index
    %c0_41 = arith.constant 0 : index
    %33 = vector.load %arg5[%c1_39, %c0_40, %c0_41] : memref<18x18x128xf32, #tpu.memory_space<vmem>>, vector<16x16x128xf32>
    %34 = vector.shape_cast %33 : vector<16x16x128xf32> to vector<256x128xf32>
    %35 = arith.truncf %34 : vector<256x128xf32> to vector<256x128xbf16>
    %c0_42 = arith.constant 0 : index
    %c0_43 = arith.constant 0 : index
    %36 = vector.load %arg6[%c0_42, %c0_43] : memref<256x128xf32, #tpu.memory_space<vmem>>, vector<256x128xf32>
    %c3 = arith.constant 3 : index
    %c0_44 = arith.constant 0 : index
    %c0_45 = arith.constant 0 : index
    %37 = vector.load %arg2[%c3, %c0_44, %c0_45] : memref<9x128x128xbf16, #tpu.memory_space<vmem>>, vector<1x128x128xbf16>
    %38 = vector.shape_cast %37 : vector<1x128x128xbf16> to vector<128x128xbf16>
    %cst_46 = arith.constant dense<0.000000e+00> : vector<256x128xf32>
    %39 = tpu.matmul %35, %38, %cst_46 {dimension_numbers = #tpu.dot_dimension_numbers<[1], [0], [0], [1], [0, 0, 1, 1], [], []>} : vector<256x128xbf16>, vector<128x128xbf16>, vector<256x128xf32> -> vector<256x128xf32>
    %40 = arith.addf %36, %39 : vector<256x128xf32>
    %c0_47 = arith.constant 0 : index
    %c0_48 = arith.constant 0 : index
    %41 = vector.load %arg6[%c0_47, %c0_48] : memref<256x128xf32, #tpu.memory_space<vmem>>, vector<256x128xf32>
    tpu.vector_store %arg6[%c0_47, %c0_48], %40 {strides = array<i32>} : memref<256x128xf32, #tpu.memory_space<vmem>>, vector<256x128xf32>,
    %c1_49 = arith.constant 1 : index
    %c1_50 = arith.constant 1 : index
    %c0_51 = arith.constant 0 : index
    %42 = vector.load %arg5[%c1_49, %c1_50, %c0_51] : memref<18x18x128xf32, #tpu.memory_space<vmem>>, vector<16x16x128xf32>
    %43 = vector.shape_cast %42 : vector<16x16x128xf32> to vector<256x128xf32>
    %44 = arith.truncf %43 : vector<256x128xf32> to vector<256x128xbf16>
    %c0_52 = arith.constant 0 : index
    %c0_53 = arith.constant 0 : index
    %45 = vector.load %arg6[%c0_52, %c0_53] : memref<256x128xf32, #tpu.memory_space<vmem>>, vector<256x128xf32>
    %c4 = arith.constant 4 : index
    %c0_54 = arith.constant 0 : index
    %c0_55 = arith.constant 0 : index
    %46 = vector.load %arg2[%c4, %c0_54, %c0_55] : memref<9x128x128xbf16, #tpu.memory_space<vmem>>, vector<1x128x128xbf16>
    %47 = vector.shape_cast %46 : vector<1x128x128xbf16> to vector<128x128xbf16>
    %cst_56 = arith.constant dense<0.000000e+00> : vector<256x128xf32>
    %48 = tpu.matmul %44, %47, %cst_56 {dimension_numbers = #tpu.dot_dimension_numbers<[1], [0], [0], [1], [0, 0, 1, 1], [], []>} : vector<256x128xbf16>, vector<128x128xbf16>, vector<256x128xf32> -> vector<256x128xf32>
    %49 = arith.addf %45, %48 : vector<256x128xf32>
    %c0_57 = arith.constant 0 : index
    %c0_58 = arith.constant 0 : index
    %50 = vector.load %arg6[%c0_57, %c0_58] : memref<256x128xf32, #tpu.memory_space<vmem>>, vector<256x128xf32>
    tpu.vector_store %arg6[%c0_57, %c0_58], %49 {strides = array<i32>} : memref<256x128xf32, #tpu.memory_space<vmem>>, vector<256x128xf32>,
    %c1_59 = arith.constant 1 : index
    %c2_60 = arith.constant 2 : index
    %c0_61 = arith.constant 0 : index
    %51 = vector.load %arg5[%c1_59, %c2_60, %c0_61] : memref<18x18x128xf32, #tpu.memory_space<vmem>>, vector<16x16x128xf32>
    %52 = vector.shape_cast %51 : vector<16x16x128xf32> to vector<256x128xf32>
    %53 = arith.truncf %52 : vector<256x128xf32> to vector<256x128xbf16>
    %c0_62 = arith.constant 0 : index
    %c0_63 = arith.constant 0 : index
    %54 = vector.load %arg6[%c0_62, %c0_63] : memref<256x128xf32, #tpu.memory_space<vmem>>, vector<256x128xf32>
    %c5 = arith.constant 5 : index
    %c0_64 = arith.constant 0 : index
    %c0_65 = arith.constant 0 : index
    %55 = vector.load %arg2[%c5, %c0_64, %c0_65] : memref<9x128x128xbf16, #tpu.memory_space<vmem>>, vector<1x128x128xbf16>
    %56 = vector.shape_cast %55 : vector<1x128x128xbf16> to vector<128x128xbf16>
    %cst_66 = arith.constant dense<0.000000e+00> : vector<256x128xf32>
    %57 = tpu.matmul %53, %56, %cst_66 {dimension_numbers = #tpu.dot_dimension_numbers<[1], [0], [0], [1], [0, 0, 1, 1], [], []>} : vector<256x128xbf16>, vector<128x128xbf16>, vector<256x128xf32> -> vector<256x128xf32>
    %58 = arith.addf %54, %57 : vector<256x128xf32>
    %c0_67 = arith.constant 0 : index
    %c0_68 = arith.constant 0 : index
    %59 = vector.load %arg6[%c0_67, %c0_68] : memref<256x128xf32, #tpu.memory_space<vmem>>, vector<256x128xf32>
    tpu.vector_store %arg6[%c0_67, %c0_68], %58 {strides = array<i32>} : memref<256x128xf32, #tpu.memory_space<vmem>>, vector<256x128xf32>,
    %c2_69 = arith.constant 2 : index
    %c0_70 = arith.constant 0 : index
    %c0_71 = arith.constant 0 : index
    %60 = vector.load %arg5[%c2_69, %c0_70, %c0_71] : memref<18x18x128xf32, #tpu.memory_space<vmem>>, vector<16x16x128xf32>
    %61 = vector.shape_cast %60 : vector<16x16x128xf32> to vector<256x128xf32>
    %62 = arith.truncf %61 : vector<256x128xf32> to vector<256x128xbf16>
    %c0_72 = arith.constant 0 : index
    %c0_73 = arith.constant 0 : index
    %63 = vector.load %arg6[%c0_72, %c0_73] : memref<256x128xf32, #tpu.memory_space<vmem>>, vector<256x128xf32>
    %c6 = arith.constant 6 : index
    %c0_74 = arith.constant 0 : index
    %c0_75 = arith.constant 0 : index
    %64 = vector.load %arg2[%c6, %c0_74, %c0_75] : memref<9x128x128xbf16, #tpu.memory_space<vmem>>, vector<1x128x128xbf16>
    %65 = vector.shape_cast %64 : vector<1x128x128xbf16> to vector<128x128xbf16>
    %cst_76 = arith.constant dense<0.000000e+00> : vector<256x128xf32>
    %66 = tpu.matmul %62, %65, %cst_76 {dimension_numbers = #tpu.dot_dimension_numbers<[1], [0], [0], [1], [0, 0, 1, 1], [], []>} : vector<256x128xbf16>, vector<128x128xbf16>, vector<256x128xf32> -> vector<256x128xf32>
    %67 = arith.addf %63, %66 : vector<256x128xf32>
    %c0_77 = arith.constant 0 : index
    %c0_78 = arith.constant 0 : index
    %68 = vector.load %arg6[%c0_77, %c0_78] : memref<256x128xf32, #tpu.memory_space<vmem>>, vector<256x128xf32>
    tpu.vector_store %arg6[%c0_77, %c0_78], %67 {strides = array<i32>} : memref<256x128xf32, #tpu.memory_space<vmem>>, vector<256x128xf32>,
    %c2_79 = arith.constant 2 : index
    %c1_80 = arith.constant 1 : index
    %c0_81 = arith.constant 0 : index
    %69 = vector.load %arg5[%c2_79, %c1_80, %c0_81] : memref<18x18x128xf32, #tpu.memory_space<vmem>>, vector<16x16x128xf32>
    %70 = vector.shape_cast %69 : vector<16x16x128xf32> to vector<256x128xf32>
    %71 = arith.truncf %70 : vector<256x128xf32> to vector<256x128xbf16>
    %c0_82 = arith.constant 0 : index
    %c0_83 = arith.constant 0 : index
    %72 = vector.load %arg6[%c0_82, %c0_83] : memref<256x128xf32, #tpu.memory_space<vmem>>, vector<256x128xf32>
    %c7 = arith.constant 7 : index
    %c0_84 = arith.constant 0 : index
    %c0_85 = arith.constant 0 : index
    %73 = vector.load %arg2[%c7, %c0_84, %c0_85] : memref<9x128x128xbf16, #tpu.memory_space<vmem>>, vector<1x128x128xbf16>
    %74 = vector.shape_cast %73 : vector<1x128x128xbf16> to vector<128x128xbf16>
    %cst_86 = arith.constant dense<0.000000e+00> : vector<256x128xf32>
    %75 = tpu.matmul %71, %74, %cst_86 {dimension_numbers = #tpu.dot_dimension_numbers<[1], [0], [0], [1], [0, 0, 1, 1], [], []>} : vector<256x128xbf16>, vector<128x128xbf16>, vector<256x128xf32> -> vector<256x128xf32>
    %76 = arith.addf %72, %75 : vector<256x128xf32>
    %c0_87 = arith.constant 0 : index
    %c0_88 = arith.constant 0 : index
    %77 = vector.load %arg6[%c0_87, %c0_88] : memref<256x128xf32, #tpu.memory_space<vmem>>, vector<256x128xf32>
    tpu.vector_store %arg6[%c0_87, %c0_88], %76 {strides = array<i32>} : memref<256x128xf32, #tpu.memory_space<vmem>>, vector<256x128xf32>,
    %c2_89 = arith.constant 2 : index
    %c2_90 = arith.constant 2 : index
    %c0_91 = arith.constant 0 : index
    %78 = vector.load %arg5[%c2_89, %c2_90, %c0_91] : memref<18x18x128xf32, #tpu.memory_space<vmem>>, vector<16x16x128xf32>
    %79 = vector.shape_cast %78 : vector<16x16x128xf32> to vector<256x128xf32>
    %80 = arith.truncf %79 : vector<256x128xf32> to vector<256x128xbf16>
    %c0_92 = arith.constant 0 : index
    %c0_93 = arith.constant 0 : index
    %81 = vector.load %arg6[%c0_92, %c0_93] : memref<256x128xf32, #tpu.memory_space<vmem>>, vector<256x128xf32>
    %c8 = arith.constant 8 : index
    %c0_94 = arith.constant 0 : index
    %c0_95 = arith.constant 0 : index
    %82 = vector.load %arg2[%c8, %c0_94, %c0_95] : memref<9x128x128xbf16, #tpu.memory_space<vmem>>, vector<1x128x128xbf16>
    %83 = vector.shape_cast %82 : vector<1x128x128xbf16> to vector<128x128xbf16>
    %cst_96 = arith.constant dense<0.000000e+00> : vector<256x128xf32>
    %84 = tpu.matmul %80, %83, %cst_96 {dimension_numbers = #tpu.dot_dimension_numbers<[1], [0], [0], [1], [0, 0, 1, 1], [], []>} : vector<256x128xbf16>, vector<128x128xbf16>, vector<256x128xf32> -> vector<256x128xf32>
    %85 = arith.addf %81, %84 : vector<256x128xf32>
    %c0_97 = arith.constant 0 : index
    %c0_98 = arith.constant 0 : index
    %86 = vector.load %arg6[%c0_97, %c0_98] : memref<256x128xf32, #tpu.memory_space<vmem>>, vector<256x128xf32>
    tpu.vector_store %arg6[%c0_97, %c0_98], %85 {strides = array<i32>} : memref<256x128xf32, #tpu.memory_space<vmem>>, vector<256x128xf32>,
    %c0_99 = arith.constant 0 : index
    %c0_100 = arith.constant 0 : index
    %87 = vector.load %arg6[%c0_99, %c0_100] : memref<256x128xf32, #tpu.memory_space<vmem>>, vector<256x128xf32>
    %c0_101 = arith.constant 0 : index
    %c0_102 = arith.constant 0 : index
    %c0_103 = arith.constant 0 : index
    %88 = vector.load %arg3[%c0_101, %c0_102, %c0_103] : memref<1x1x128xf32, #tpu.memory_space<vmem>>, vector<1x1x128xf32>
    %89 = vector.shape_cast %88 : vector<1x1x128xf32> to vector<1x128xf32>
    %90 = vector.broadcast %89 : vector<1x128xf32> to vector<256x128xf32>
    %91 = arith.addf %87, %90 : vector<256x128xf32>
    %92 = arith.truncf %91 : vector<256x128xf32> to vector<256x128xbf16>
    %c0_104 = arith.constant 0 : index
    %c0_105 = arith.constant 0 : index
    %c0_106 = arith.constant 0 : index
    %93 = vector.load %arg4[%c0_104, %c0_105, %c0_106] : memref<1x256x128xbf16, #tpu.memory_space<vmem>>, vector<1x256x128xbf16>
    %94 = vector.shape_cast %93 : vector<1x256x128xbf16> to vector<256x128xbf16>
    %95 = vector.shape_cast %92 : vector<256x128xbf16> to vector<1x256x128xbf16>
    tpu.vector_store %arg4[%c0_104, %c0_105, %c0_106], %95 {strides = array<i32>} : memref<1x256x128xbf16, #tpu.memory_space<vmem>>, vector<1x256x128xbf16>,
    return
  }
  func.func @transform_0(%arg0: i32) -> (i32, i32, i32, i32) {
    %c0_i32 = arith.constant 0 : i32
    %c0_i32_0 = arith.constant 0 : i32
    %c0_i32_1 = arith.constant 0 : i32
    %c0_i32_2 = arith.constant 0 : i32
    return %arg0, %c0_i32, %c0_i32_0, %c0_i32_1 : i32, i32, i32, i32
  }
  func.func @transform_1(%arg0: i32) -> (i32, i32, i32) {
    %c0_i32 = arith.constant 0 : i32
    %c0_i32_0 = arith.constant 0 : i32
    %c0_i32_1 = arith.constant 0 : i32
    %c0_i32_2 = arith.constant 0 : i32
    return %c0_i32, %c0_i32_0, %c0_i32_1 : i32, i32, i32
  }
  func.func @transform_2(%arg0: i32) -> (i32, i32, i32) {
    %c0_i32 = arith.constant 0 : i32
    %c0_i32_0 = arith.constant 0 : i32
    %c0_i32_1 = arith.constant 0 : i32
    return %arg0, %c0_i32, %c0_i32_0 : i32, i32, i32
  }
  func.func @transform_3(%arg0: i32) -> (i32, i32, i32) {
    %c0_i32 = arith.constant 0 : i32
    %c0_i32_0 = arith.constant 0 : i32
    %c0_i32_1 = arith.constant 0 : i32
    return %arg0, %c0_i32, %c0_i32_0 : i32, i32, i32
  }
}

</mosaic_0001>

<bundles_post_ra>
// kernel: tpu_custom_call.1
= control target key start
LH: loop header
LB: loop body
LE: loop exit
PB: predicated region body
PF: predicated region fallthrough
CT: control target
= control target key end

     0   :  { %8 = vsyncpa [#allocation5], 0  ;;  %s6401_s0 = inlined_call_operand.vmem [shape: bf16[2,18,18,128], index: 0, kind: input, shape index: {}]   ;;  %s6402_s1 = inlined_call_operand.vmem [shape: bf16[9,128,128], index: 1, kind: input, shape index: {}]   ;;  %s6403_s2 = inlined_call_operand.vmem [shape: f32[2,1,128], index: 2, kind: input, shape index: {}]   ;;  %s6404_s3 = inlined_call_operand.hbm [shape: bf16[2,256,128], index: 3, kind: output, shape index: {}]  }
   0x1   :  { %10 = vsyncpa [#allocation5 + $0x1], 0  ;;  %s5313_s12 = smov 0   ;;  %s5315_s13 = smov 0  }
   0x2   :  { %s5317_s14 = smov 0   ;;  %s5319_s15 = smov 0  }
   0x3 LB: > { %s5334_s16 = sadd.s32 4294967295, %s5288_s15   ;;  %s4025_s17 = sadd.s32 4294967294, %s5288_s15   ;;  %s5288_s15 = sphi %s5319_s15, %s6438_s15   ;;  %s5284_s14 = sphi %s5317_s14, %s6437_s14   ;;  %s5280_s13 = sphi %s5315_s13, %s6436_s13   ;;  %s5276_s12 = sphi %s5313_s12, %s6435_s12  }
   0x4   : > { %s5338_s18 = sadd.s32 1, %s5288_s15   ;;  %s96_s19 = sadd.s32 1, %s5284_s14 }
   0x5   : > { %s93_s20 = ssub.s32 %s5288_s15, %s5338_s18  ;;  %p106_p0 = scmp.ne.s32.totalorder %s5284_s14, %s5280_s13 }
   0x6   : > { %p94_p1 = scmp.eq.s32.totalorder %s93_s20, 0  ;;  %p107_p2 = scmp.eq.s32.totalorder %s5334_s16, 1 }
   0x7   : > { %p112_p3 = scmp.ne.s32.totalorder %s5280_s13, %s5276_s12  ;;  %p113_p4 = scmp.eq.s32.totalorder %s4025_s17, 1 }
   0x8   : > { %s5349_s21 = scalar_select %p94_p1, %s5284_s14, %s96_s19  }
   0x9   : > { %p5351_p5 = por %p107_p2, %p106_p0  ;;  %p5355_p6 = por %p113_p4, %p112_p3 }
   0xa   : > { %p4028_p7 = scmp.ge.s32.totalorder %s5288_s15, 1  ;;  %p148_p8 = scmp.lt.s32.totalorder %s5288_s15, 3 }
   0xc   : > { %p149_p9 = pnand %p4028_p7, %p148_p8 }
   0xe   : > { %152 = sbr.rel (%p149_p9) target bundleno = 553 (0x229), region = 32 }
  0x13   : > { %v5147_v0 = vld [vmem:[%s6402_s1 + $0x38] sm:$0xff]   ;;  %p175_p10 = scmp.lt.s32.totalorder %s5334_s16, 1  ;;  %v5148_v1 = vld [vmem:[%s6402_s1 + $0x30] sm:$0xff]   ;;  %v5149_v2 = vld [vmem:[%s6402_s1 + $0x28] sm:$0xff]   ;;  %s172_s29 = sand.u32 1, %s5280_s13  }
  0x14   : > { %4657 = vmatprep.subr.bf16.mxu0 %v5147_v0  ;;  %5089 = vmatprep.subr.bf16.mxu1 %v5147_v0  ;;  %v5150_v3 = vld [vmem:[%s6402_s1 + $0x20] sm:$0xff]   ;;  %v5151_v18 = vld [vmem:[%s6402_s1 + $0x18] sm:$0xff]   ;;  %v5152_v27 = vld [vmem:[%s6402_s1 + $0x10] sm:$0xff]   ;;  %s4029_s30 = sshll.u32 %s172_s29, 7  ;;  %s5290_s10 = smov [#allocation4]  }
  0x15   : > { %s5369_s28 = scalar_select %p175_p10, %s5334_s16, 1  ;;  %4658 = vmatpush3.bf16.msra.mxu0 %v5147_v0  ;;  %5097 = vmatpush3.bf16.msra.mxu1 %v5147_v0  ;;  %v5153_v32 = vld [vmem:[%s6402_s1 + $0x8] sm:$0xff]   ;;  %v5154_v45 = vld [vmem:[%s6402_s1] sm:$0xff]   ;;  %v5157_v48 = vld [vmem:[%s6402_s1 + $0x78] sm:$0xff]  }
  0x16   : > { %4659 = vmatprep.subr.bf16.mxu0 %v5148_v1  ;;  %5090 = vmatprep.subr.bf16.mxu1 %v5148_v1  ;;  %v5158_v55 = vld [vmem:[%s6402_s1 + $0xb8] sm:$0xff]   ;;  %v5159_v60 = vld [vmem:[%s6402_s1 + $0x70] sm:$0xff]   ;;  %s5232_s11 = sshll.u32 %s5290_s10, 4  ;;  %s5233_s11 = int_to_ptr.vmem [resolvable:$false] %s5232_s11 }
  0x17   : > { %s5105_s4 = smul.u32 216, %s5369_s28  ;;  %v5160_v61 = vld [vmem:[%s6402_s1 + $0xb0] sm:$0xff]   ;;  %s182_s27 = scalar_lea.vmem %s6403_s2, %s5369_s28 }
  0x18   : > { %s6256_s28 = scalar_lea.vmem [#allocation4], %s4029_s30  ;;  %s5234_s17 = scalar_lea.vmem %s5233_s11, 4096 }
  0x19   : > { %s5378_s7 = scalar_lea.vmem %s6401_s0, %s5105_s4  ;;  %4660 = vmatpush3.bf16.msra.mxu0 %v5148_v1  ;;  %5098 = vmatpush3.bf16.msra.mxu1 %v5148_v1  ;;  %s4301_s4 = sshll.u32 %s5334_s16, 11 }
  0x1a   : > { %4661 = vmatprep.subr.bf16.mxu0 %v5149_v2  ;;  %5091 = vmatprep.subr.bf16.mxu1 %v5149_v2  ;;  %v4303_v4 = vld [vmem:[%s5378_s7] sm:$0xff]   ;;  %v5388_v12 = vld [vmem:[%s5378_s7 + $0xc] sm:$0xff]   ;;  %v4418_v19 = vld [vmem:[%s5378_s7 + $0x18] sm:$0xff]   ;;  %s3954_s5 = sshll.u32 %s6256_s28, 4  ;;  %s6353_s8 = scalar_lea.hbm %s6404_s3, %s4301_s4  ;;  %s6355_s5 = int_to_ptr.vmem [resolvable:$true] %s3954_s5 }
  0x1b   : > { %v5155_v5 = vld [vmem:[%s5378_s7] sm:$0xff]  ;;  %v4304_v7 = vunpack.c.l.bf16 %v4303_v4  ;;  %v4305_v8 = vunpack.c.h.bf16 %v4303_v4  ;;  %v5391_v13 = vld [vmem:[%s5378_s7 + $0x6c] sm:$0xff]   ;;  %v241_v14 = vunpack.c.l.bf16 %v5388_v12  ;;  %v242_v15 = vunpack.c.h.bf16 %v5388_v12  ;;  %v4422_v20 = vld [vmem:[%s5378_s7 + $0x78] sm:$0xff]   ;;  %s6361_s16 = scalar_lea.sflag [#allocation5], %s172_s29  ;;  %s5228_s9 = scalar_lea.vmem %s6355_s5, 2048 }
  0x1c   : > { %v4421_v6 = vld [vmem:[%s5378_s7 + $0x60] sm:$0xff]   ;;  %4673 = vmatprep.mubr.bf16.mxu0 %v5155_v5  ;;  %v265_v16 = vunpack.c.l.bf16 %v5391_v13  ;;  %v266_v17 = vunpack.c.h.bf16 %v5391_v13  ;;  %v4308_v21 = vunpack.c.l.bf16 %v4418_v19  ;;  %v4309_v22 = vunpack.c.h.bf16 %v4418_v19  ;;  %v4419_v33 = vld [vmem:[%s5378_s7 + $0x30] sm:$0xff]   ;;  %v4420_v46 = vld [vmem:[%s5378_s7 + $0x48] sm:$0xff]   ;;  %p5229_p11 = scmp.ne.s32.totalorder %s6355_s5, %s5228_s9  ;;  %p5235_p0 = scmp.lt.s32.totalorder %s6355_s5, %s5233_s11 }
  0x1d   : > { %v4320_v9 = vunpack.c.l.bf16 %v4421_v6  ;;  %v4321_v10 = vunpack.c.h.bf16 %v4421_v6  ;;  %v5156_v11 = vld [vmem:[%s5378_s7 + $0x60] sm:$0xff]  ;;  %4662 = vmatpush3.bf16.msra.mxu0 %v5149_v2  ;;  %5099 = vmatpush3.bf16.msra.mxu1 %v5149_v2  ;;  %292 = vst [vmem:[#allocation2] sm:$0xff] %v4304_v7  ;;  %293 = vst [vmem:[#allocation2 + $0x8] sm:$0xff] %v4305_v8  ;;  %v4324_v23 = vunpack.c.l.bf16 %v4422_v20  ;;  %v4325_v24 = vunpack.c.h.bf16 %v4422_v20  ;;  %v4423_v34 = vld [vmem:[%s5378_s7 + $0x90] sm:$0xff]   ;;  %p5236_p1 = scmp.lt.s32.totalorder %s5234_s17, %s5228_s9 }
  0x1e   : > { %4663 = vmatprep.subr.bf16.mxu0 %v5150_v3  ;;  %5092 = vmatprep.subr.bf16.mxu1 %v5150_v3  ;;  %295 = vst [vmem:[#allocation2 + $0x18] sm:$0xff] %v241_v14  ;;  %296 = vst [vmem:[#allocation2 + $0x20] sm:$0xff] %v242_v15  ;;  %v5403_v25 = vld [vmem:[%s5378_s7 + $0x24] sm:$0xff]   ;;  %v4312_v35 = vunpack.c.l.bf16 %v4419_v33  ;;  %v4313_v36 = vunpack.c.h.bf16 %v4419_v33  ;;  %v4328_v37 = vunpack.c.l.bf16 %v4423_v34  ;;  %v4329_v38 = vunpack.c.h.bf16 %v4423_v34  ;;  %v5421_v39 = vld [vmem:[%s5378_s7 + $0x3c] sm:$0xff]   ;;  %p5230_p12 = pnand %p5229_p11, %p5351_p5 }
  0x1f   : > { %316 = vst [vmem:[#allocation2 + $0xc0] sm:$0xff] %v4320_v9  ;;  %317 = vst [vmem:[#allocation2 + $0xc8] sm:$0xff] %v4321_v10  ;;  %4689 = vmatprep.mubr.bf16.mxu1 %v5156_v11  ;;  %v5406_v26 = vld [vmem:[%s5378_s7 + $0x84] sm:$0xff]   ;;  %v247_v28 = vunpack.c.l.bf16 %v5403_v25  ;;  %v248_v29 = vunpack.c.h.bf16 %v5403_v25  ;;  %v5424_v40 = vld [vmem:[%s5378_s7 + $0x9c] sm:$0xff]   ;;  %v253_v41 = vunpack.c.l.bf16 %v5421_v39  ;;  %v254_v42 = vunpack.c.h.bf16 %v5421_v39  ;;  %p5237_p2 = por %p5236_p1, %p5235_p0 }
  0x20   : > { %319 = vst [vmem:[#allocation2 + $0xd8] sm:$0xff] %v265_v16  ;;  %320 = vst [vmem:[#allocation2 + $0xe0] sm:$0xff] %v266_v17  ;;  %v271_v30 = vunpack.c.l.bf16 %v5406_v26  ;;  %v272_v31 = vunpack.c.h.bf16 %v5406_v26  ;;  %v277_v43 = vunpack.c.l.bf16 %v5424_v40  ;;  %v278_v44 = vunpack.c.h.bf16 %v5424_v40  ;;  %v4424_v47 = vld [vmem:[%s5378_s7 + $0xa8] sm:$0xff]   ;;  %v5439_v53 = vld [vmem:[%s5378_s7 + $0x54] sm:$0xff]   ;;  %p5231_p13 = pneg %p5230_p12 }
  0x21   : > { %4664 = vmatpush3.bf16.msra.mxu0 %v5150_v3  ;;  %5100 = vmatpush3.bf16.msra.mxu1 %v5150_v3  ;;  %298 = vst [vmem:[#allocation2 + $0x30] sm:$0xff] %v4308_v21  ;;  %299 = vst [vmem:[#allocation2 + $0x38] sm:$0xff] %v4309_v22  ;;  %v4316_v49 = vunpack.c.l.bf16 %v4420_v46  ;;  %v4317_v50 = vunpack.c.h.bf16 %v4420_v46  ;;  %v4332_v51 = vunpack.c.l.bf16 %v4424_v47  ;;  %v4333_v52 = vunpack.c.h.bf16 %v4424_v47  ;;  %v5442_v54 = vld [vmem:[%s5378_s7 + $0xb4] sm:$0xff]   ;;  %v186_v62 = vld [vmem:[%s5378_s7 + $0x8] sm:$0x1] }
  0x22   : > { %4665 = vmatprep.subr.bf16.mxu0 %v5151_v18  ;;  %5093 = vmatprep.subr.bf16.mxu1 %v5151_v18  ;;  %322 = vst [vmem:[#allocation2 + $0xf0] sm:$0xff] %v4324_v23  ;;  %323 = vst [vmem:[#allocation2 + $0xf8] sm:$0xff] %v4325_v24  ;;  %v259_v56 = vunpack.c.l.bf16 %v5439_v53  ;;  %v260_v57 = vunpack.c.h.bf16 %v5439_v53  ;;  %v283_v58 = vunpack.c.l.bf16 %v5442_v54  ;;  %v284_v59 = vunpack.c.h.bf16 %v5442_v54  ;;  %v5459_v63 = vld [vmem:[%s5378_s7 + $0x18] sm:$0xff]  ;;  %v189_v2 = vld [vmem:[%s5378_s7 + $0x14] sm:$0x1]  ;;  %p5238_p3 = pnand %p5237_p2, %p5231_p13 }
  0x23   : > { %301 = vst [vmem:[#allocation2 + $0x48] sm:$0xff] %v247_v28  ;;  %302 = vst [vmem:[#allocation2 + $0x50] sm:$0xff] %v248_v29  ;;  %v5162_v0 = vld [vmem:[%s5378_s7 + $0x78] sm:$0xff]  ;;  %v240_v1 = vunpack.c.l.bf16 %v186_v62  ;;  %v243_v3 = vunpack.c.l.bf16 %v189_v2  ;;  %v5163_v4 = vld [vmem:[%s6402_s1 + $0x68] sm:$0xff]  }
  0x24   : > { %325 = vst [vmem:[#allocation2 + $0x108] sm:$0xff] %v271_v30  ;;  %326 = vst [vmem:[#allocation2 + $0x110] sm:$0xff] %v272_v31  ;;  %v5164_v5 = vld [vmem:[%s6402_s1 + $0xa8] sm:$0xff]   ;;  %v192_v6 = vld [vmem:[%s5378_s7 + $0x20] sm:$0x1] }
  0x25   : > { %4666 = vmatpush3.bf16.msra.mxu0 %v5151_v18  ;;  %5101 = vmatpush3.bf16.msra.mxu1 %v5151_v18  ;;  %304 = vst [vmem:[#allocation2 + $0x60] sm:$0xff] %v4312_v35  ;;  %305 = vst [vmem:[#allocation2 + $0x68] sm:$0xff] %v4313_v36  ;;  %v246_v7 = vunpack.c.l.bf16 %v192_v6  ;;  %v195_v8 = vld [vmem:[%s5378_s7 + $0x2c] sm:$0x1]  ;;  %v5165_v10 = vld [vmem:[%s6402_s1 + $0x60] sm:$0xff]  }
  0x26   : > { %4667 = vmatprep.subr.bf16.mxu0 %v5152_v27  ;;  %5094 = vmatprep.subr.bf16.mxu1 %v5152_v27  ;;  %328 = vst [vmem:[#allocation2 + $0x120] sm:$0xff] %v4328_v37  ;;  %329 = vst [vmem:[#allocation2 + $0x128] sm:$0xff] %v4329_v38  ;;  %v249_v9 = vunpack.c.l.bf16 %v195_v8  ;;  %v5166_v11 = vld [vmem:[%s6402_s1 + $0xa0] sm:$0xff]   ;;  %v5482_v14 = vld [vmem:[%s5378_s7 + $0x30] sm:$0xff] }
  0x27   : > { %307 = vst [vmem:[#allocation2 + $0x78] sm:$0xff] %v253_v41  ;;  %308 = vst [vmem:[#allocation2 + $0x80] sm:$0xff] %v254_v42  ;;  %v5485_v15 = vld [vmem:[%s5378_s7 + $0x90] sm:$0xff]  ;;  %v201_v17 = vld [vmem:[%s5378_s7 + $0x44] sm:$0x1] }
  0x28   : > { %331 = vst [vmem:[#allocation2 + $0x138] sm:$0xff] %v277_v43  ;;  %332 = vst [vmem:[#allocation2 + $0x140] sm:$0xff] %v278_v44  ;;  %v255_v18 = vunpack.c.l.bf16 %v201_v17  ;;  %v5169_v19 = vld [vmem:[%s6402_s1 + $0x58] sm:$0xff]   ;;  %v204_v21 = vld [vmem:[%s5378_s7 + $0x50] sm:$0x1] }
  0x29   : > { %4668 = vmatpush3.bf16.msra.mxu0 %v5152_v27  ;;  %5102 = vmatpush3.bf16.msra.mxu1 %v5152_v27  ;;  %310 = vst [vmem:[#allocation2 + $0x90] sm:$0xff] %v4316_v49  ;;  %311 = vst [vmem:[#allocation2 + $0x98] sm:$0xff] %v4317_v50  ;;  %v5170_v20 = vld [vmem:[%s6402_s1 + $0x98] sm:$0xff]   ;;  %v258_v22 = vunpack.c.l.bf16 %v204_v21  ;;  %v5171_v23 = vld [vmem:[%s6402_s1 + $0x50] sm:$0xff]  }
  0x2a   : > { %4669 = vmatprep.subr.bf16.mxu0 %v5153_v32  ;;  %5095 = vmatprep.subr.bf16.mxu1 %v5153_v32  ;;  %334 = vst [vmem:[#allocation2 + $0x150] sm:$0xff] %v4332_v51  ;;  %335 = vst [vmem:[#allocation2 + $0x158] sm:$0xff] %v4333_v52  ;;  %v207_v24 = vld [vmem:[%s5378_s7 + $0x5c] sm:$0x1]  ;;  %v5507_v27 = vld [vmem:[%s5378_s7 + $0x48] sm:$0xff] }
  0x2b   : > { %313 = vst [vmem:[#allocation2 + $0xa8] sm:$0xff] %v259_v56  ;;  %314 = vst [vmem:[#allocation2 + $0xb0] sm:$0xff] %v260_v57  ;;  %v261_v28 = vunpack.c.l.bf16 %v207_v24  ;;  %v5510_v29 = vld [vmem:[%s5378_s7 + $0xa8] sm:$0xff]  ;;  %v213_v37 = vld [vmem:[%s5378_s7 + $0x74] sm:$0x1] }
  0x2c   : > { %337 = vst [vmem:[#allocation2 + $0x168] sm:$0xff] %v283_v58  ;;  %338 = vst [vmem:[#allocation2 + $0x170] sm:$0xff] %v284_v59  ;;  %v5175_v30 = vld [vmem:[%s6402_s1 + $0x48] sm:$0xff]   ;;  %v267_v41 = vunpack.c.l.bf16 %v213_v37  ;;  %v5177_v42 = vld [vmem:[%s6402_s1 + $0x40] sm:$0xff]  }
  0x2d   : > { %4670 = vmatpush3.bf16.msra.mxu0 %v5153_v32  ;;  %5103 = vmatpush3.bf16.msra.mxu1 %v5153_v32  ;;  %294 = vst [vmem:[#allocation2 + $0x10] sm:$0x3] %v240_v1  ;;  %297 = vst [vmem:[#allocation2 + $0x28] sm:$0x3] %v243_v3  ;;  %v5176_v31 = vld [vmem:[%s6402_s1 + $0x88] sm:$0xff]   ;;  %v5178_v43 = vld [vmem:[%s6402_s1 + $0x80] sm:$0xff]  }
  0x2e   : > { %4671 = vmatprep.subr.bf16.mxu0 %v5154_v45  ;;  %5096 = vmatprep.subr.bf16.mxu1 %v5154_v45  ;;  %300 = vst [vmem:[#allocation2 + $0x40] sm:$0x3] %v246_v7  ;;  %303 = vst [vmem:[#allocation2 + $0x58] sm:$0x3] %v249_v9  ;;  %v747_v32 = vld [vmem:[#allocation2 + $0x1] sm:$0xff]  ;;  %v749_v47 = vld [vmem:[#allocation2 + $0x19] sm:$0xff] }
  0x2f   : > { %309 = vst [vmem:[#allocation2 + $0x88] sm:$0x3] %v255_v18  ;;  %312 = vst [vmem:[#allocation2 + $0xa0] sm:$0x3] %v258_v22  ;;  %v210_v33 = vld [vmem:[%s5378_s7 + $0x68] sm:$0x1] }
  0x30   : > { %315 = vst [vmem:[#allocation2 + $0xb8] sm:$0x3] %v261_v28  ;;  %v1117_v35 = vld [vmem:[#allocation2 + $0x2] sm:$0xff]  ;;  %v264_v36 = vunpack.c.l.bf16 %v210_v33  ;;  %321 = vst [vmem:[#allocation2 + $0xe8] sm:$0x3] %v267_v41  ;;  %v5179_v51 = vld [vmem:[%s6402_s1 + $0xf8] sm:$0xff]  }
  0x31   : > { %4672 = vmatpush3.bf16.msra.mxu0 %v5154_v45  ;;  %5104 = vmatpush3.bf16.msra.mxu1 %v5154_v45  ;;  %v216_v44 = vld [vmem:[%s5378_s7 + $0x80] sm:$0x1]  ;;  %v5180_v52 = vld [vmem:[%s6402_s1 + $0x138] sm:$0xff]   ;;  %v225_v3 = vld [vmem:[%s5378_s7 + $0xa4] sm:$0x1] }
  0x32   : > { %4705 = vmatprep.subr.bf16.mxu1 %v5157_v48  ;;  %4753 = vmatprep.subr.bf16.mxu0 %v5158_v55  ;;  %318 = vst [vmem:[#allocation2 + $0xd0] sm:$0x3] %v264_v36  ;;  %v270_v49 = vunpack.c.l.bf16 %v216_v44  ;;  %v751_v57 = vld [vmem:[#allocation2 + $0x31] sm:$0xff]  ;;  %v279_v7 = vunpack.c.l.bf16 %v225_v3  ;;  %v753_v8 = vld [vmem:[#allocation2 + $0x49] sm:$0xff]  ;;  %v231_v24 = vld [vmem:[%s5378_s7 + $0xbc] sm:$0x1] }
  0x33   : > { %v1121_v59 = vld [vmem:[#allocation2 + $0x32] sm:$0xff]  ;;  %v1123_v9 = vld [vmem:[#allocation2 + $0x4a] sm:$0xff]  ;;  %v5185_v33 = vld [vmem:[%s6402_s1 + $0xe0] sm:$0xff]  }
  0x34   : > { %4674 = vmatmul.mubr.bf16.vlgmr.msra.gmra.mxu0 %v5388_v12  ;;  %4690 = vmatmul.mubr.bf16.vlgmr.msra.gmra.mxu1 %v5391_v13  ;;  %v198_v13 = vld [vmem:[%s5378_s7 + $0x38] sm:$0x1]  ;;  %v748_v34 = vld [vmem:[#allocation2 + $0x9] sm:$0xff]  ;;  %v750_v50 = vld [vmem:[#allocation2 + $0x21] sm:$0xff]  ;;  %324 = vst [vmem:[#allocation2 + $0x100] sm:$0x3] %v270_v49 }
  0x35   : > { %4706 = vmatpush3.bf16.msra.mxu1 %v5157_v48  ;;  %4754 = vmatpush3.bf16.msra.mxu0 %v5158_v55  ;;  %v252_v16 = vunpack.c.l.bf16 %v198_v13  ;;  %v1118_v38 = vld [vmem:[#allocation2 + $0xa] sm:$0xff]  ;;  %v779_v45 = vpack.c.bf16 %v748_v34, %v747_v32  ;;  %v1119_v48 = vld [vmem:[#allocation2 + $0x1a] sm:$0xff]  ;;  %v1120_v56 = vld [vmem:[#allocation2 + $0x22] sm:$0xff]  ;;  %333 = vst [vmem:[#allocation2 + $0x148] sm:$0x3] %v279_v7 }
  0x36   : > { %4707 = vmatprep.subr.bf16.mxu1 %v5159_v60  ;;  %4755 = vmatprep.subr.bf16.mxu0 %v5160_v61  ;;  %v1149_v46 = vpack.c.bf16 %v1118_v38, %v1117_v35  ;;  %v219_v55 = vld [vmem:[%s5378_s7 + $0x8c] sm:$0x1]  ;;  %v222_v62 = vld [vmem:[%s5378_s7 + $0x98] sm:$0x1]  ;;  %v5543_v1 = vpack.c.bf16 %v1120_v56, %v1119_v48  ;;  %v5181_v6 = vld [vmem:[%s6402_s1 + $0xf0] sm:$0xff]  }
  0x37   : > { %4677 = vmatprep.mubr.bf16.mxu0 %v5459_v63  ;;  %4693 = vmatprep.mubr.bf16.mxu1 %v5162_v0  ;;  %306 = vst [vmem:[#allocation2 + $0x70] sm:$0x3] %v252_v16  ;;  %v273_v58 = vunpack.c.l.bf16 %v219_v55  ;;  %v5541_v0 = vpack.c.bf16 %v750_v50, %v749_v47  ;;  %v276_v2 = vunpack.c.l.bf16 %v222_v62  ;;  %v1125_v13 = vld [vmem:[#allocation2 + $0x62] sm:$0xff]  ;;  %v754_v17 = vld [vmem:[#allocation2 + $0x51] sm:$0xff]  ;;  %v757_v34 = vld [vmem:[#allocation2 + $0x79] sm:$0xff] }
  0x38   : > { %v5183_v16 = vld [vmem:[%s6402_s1 + $0xe8] sm:$0xff]   ;;  %v1124_v18 = vld [vmem:[#allocation2 + $0x52] sm:$0xff]  ;;  %v1127_v36 = vld [vmem:[#allocation2 + $0x7a] sm:$0xff] }
  0x39   : > { %4708 = vmatpush3.bf16.msra.mxu1 %v5159_v60  ;;  %4756 = vmatpush3.bf16.msra.mxu0 %v5160_v61  ;;  %v752_v60 = vld [vmem:[#allocation2 + $0x39] sm:$0xff]  ;;  %327 = vst [vmem:[#allocation2 + $0x118] sm:$0x3] %v273_v58  ;;  %330 = vst [vmem:[#allocation2 + $0x130] sm:$0x3] %v276_v2  ;;  %v5184_v22 = vld [vmem:[%s6402_s1 + $0x128] sm:$0xff]   ;;  %v5570_v28 = vpack.c.bf16 %v1124_v18, %v1123_v9 }
  0x3a   : > { %4709 = vmatprep.subr.bf16.mxu1 %v5163_v4  ;;  %4757 = vmatprep.subr.bf16.mxu0 %v5164_v5  ;;  %v1122_v61 = vld [vmem:[#allocation2 + $0x3a] sm:$0xff]  ;;  %v1128_v38 = vld [vmem:[#allocation2 + $0x82] sm:$0xff]  ;;  %v759_v41 = vld [vmem:[#allocation2 + $0x91] sm:$0xff] }
  0x3b   : > { %v758_v35 = vld [vmem:[#allocation2 + $0x81] sm:$0xff]  ;;  %v5594_v48 = vpack.c.bf16 %v1128_v38, %v1127_v36  ;;  %v1131_v55 = vld [vmem:[#allocation2 + $0xaa] sm:$0xff] }
  0x3c   : > { %4678 = vmatmul.mubr.bf16.gmra.mxu0 %v5403_v25  ;;  %4694 = vmatmul.mubr.bf16.gmra.mxu1 %v5406_v26  ;;  %v5172_v26 = vld [vmem:[%s6402_s1 + $0x90] sm:$0xff]   ;;  %v5186_v37 = vld [vmem:[%s6402_s1 + $0x120] sm:$0xff]   ;;  %v5592_v47 = vpack.c.bf16 %v758_v35, %v757_v34  ;;  %v5191_v2 = vld [vmem:[%s6402_s1 + $0xc8] sm:$0xff]  }
  0x3d   : > { %4710 = vmatpush3.bf16.msra.mxu1 %v5163_v4  ;;  %4758 = vmatpush3.bf16.msra.mxu0 %v5164_v5  ;;  %v5546_v4 = vpack.c.bf16 %v752_v60, %v751_v57  ;;  %v5548_v5 = vpack.c.bf16 %v1122_v61, %v1121_v59  ;;  %v1130_v44 = vld [vmem:[#allocation2 + $0x9a] sm:$0xff]  ;;  %v5190_v56 = vld [vmem:[%s6402_s1 + $0x110] sm:$0xff]   ;;  %v1133_v58 = vld [vmem:[#allocation2 + $0xc2] sm:$0xff] }
  0x3e   : > { %4711 = vmatprep.subr.bf16.mxu1 %v5165_v10  ;;  %4759 = vmatprep.subr.bf16.mxu0 %v5166_v11  ;;  %v1126_v21 = vld [vmem:[#allocation2 + $0x6a] sm:$0xff]  ;;  %v763_v57 = vld [vmem:[#allocation2 + $0xc1] sm:$0xff]  ;;  %v1132_v60 = vld [vmem:[#allocation2 + $0xb2] sm:$0xff] }
  0x3f   : > { %4681 = vmatprep.mubr.bf16.mxu0 %v5482_v14  ;;  %4697 = vmatprep.mubr.bf16.mxu1 %v5485_v15  ;;  %v5574_v32 = vpack.c.bf16 %v1126_v21, %v1125_v13  ;;  %v762_v59 = vld [vmem:[#allocation2 + $0xb1] sm:$0xff]  ;;  %v764_v61 = vld [vmem:[#allocation2 + $0xc9] sm:$0xff]  ;;  %v5618_v7 = vpack.c.bf16 %v1132_v60, %v1131_v55  ;;  %v766_v13 = vld [vmem:[#allocation2 + $0xe1] sm:$0xff] }
  0x40   : > { %v1134_v62 = vld [vmem:[#allocation2 + $0xca] sm:$0xff]  ;;  %v5194_v18 = vld [vmem:[%s6402_s1 + $0x100] sm:$0xff]   ;;  %v1137_v21 = vld [vmem:[#allocation2 + $0xf2] sm:$0xff] }
  0x41   : > { %4712 = vmatpush3.bf16.msra.mxu1 %v5165_v10  ;;  %4760 = vmatpush3.bf16.msra.mxu0 %v5166_v11  ;;  %v5182_v10 = vld [vmem:[%s6402_s1 + $0x130] sm:$0xff]   ;;  %v755_v11 = vld [vmem:[#allocation2 + $0x61] sm:$0xff]  ;;  %v5622_v9 = vpack.c.bf16 %v1134_v62, %v1133_v58  ;;  %v5644_v35 = vld [vmem:[%s6402_s1 + $0x1b8] sm:$0xff]  }
  0x42   : > { %4713 = vmatprep.subr.bf16.mxu1 %v5169_v19  ;;  %4761 = vmatprep.subr.bf16.mxu0 %v5170_v20  ;;  %v5192_v3 = vld [vmem:[%s6402_s1 + $0x108] sm:$0xff]  }
  0x43   : > { %v234_v34 = vld [vmem:[%s5378_s7 + $0xc8] sm:$0x1]  ;;  %v772_v55 = vld [vmem:[#allocation2 + $0x129] sm:$0xff] }
  0x44   : > { %4682 = vmatmul.mubr.bf16.gmra.mxu0 %v5421_v39  ;;  %4698 = vmatmul.mubr.bf16.gmra.mxu1 %v5424_v40  ;;  %v288_v36 = vunpack.c.l.bf16 %v234_v34  ;;  %v774_v62 = vld [vmem:[#allocation2 + $0x141] sm:$0xff] }
  0x45   : > { %4714 = vmatpush3.bf16.msra.mxu1 %v5169_v19  ;;  %4762 = vmatpush3.bf16.msra.mxu0 %v5170_v20  ;;  %v228_v19 = vld [vmem:[%s5378_s7 + $0xb0] sm:$0x1] }
  0x46   : > { %4715 = vmatprep.subr.bf16.mxu1 %v5171_v23  ;;  %4763 = vmatprep.subr.bf16.mxu0 %v5172_v26  ;;  %v756_v20 = vld [vmem:[#allocation2 + $0x69] sm:$0xff]  ;;  %342 = vst [vmem:[#allocation2 + $0x190] sm:$0x3] %v288_v36 }
  0x47   : > { %4685 = vmatprep.mubr.bf16.mxu0 %v5507_v27  ;;  %4701 = vmatprep.mubr.bf16.mxu1 %v5510_v29 }
  0x49   : > { %4716 = vmatpush3.bf16.msra.mxu1 %v5171_v23  ;;  %4764 = vmatpush3.bf16.msra.mxu0 %v5172_v26  ;;  %v282_v23 = vunpack.c.l.bf16 %v228_v19  ;;  %v5568_v26 = vpack.c.bf16 %v754_v17, %v753_v8  ;;  %v5620_v8 = vpack.c.bf16 %v764_v61, %v763_v57  ;;  %v1136_v17 = vld [vmem:[#allocation2 + $0xe2] sm:$0xff]  ;;  %v767_v19 = vld [vmem:[#allocation2 + $0xf1] sm:$0xff]  ;;  %v773_v61 = vld [vmem:[#allocation2 + $0x139] sm:$0xff] }
  0x4a   : > { %4717 = vmatprep.subr.bf16.mxu1 %v5175_v30  ;;  %4765 = vmatprep.subr.bf16.mxu0 %v5176_v31 }
  0x4b   : > { %336 = vst [vmem:[#allocation2 + $0x160] sm:$0x3] %v282_v23  ;;  %v5637_v23 = vld [vmem:[%s6402_s1 + $0x178] sm:$0xff]  }
  0x4c   : > { %4686 = vmatmul.mubr.bf16.gmra.mxu0 %v5439_v53  ;;  %4702 = vmatmul.mubr.bf16.gmra.mxu1 %v5442_v54 }
  0x4d   : > { %4718 = vmatpush3.bf16.msra.mxu1 %v5175_v30  ;;  %4766 = vmatpush3.bf16.msra.mxu0 %v5176_v31  ;;  %v285_v30 = vunpack.c.l.bf16 %v231_v24  ;;  %v5572_v31 = vpack.c.bf16 %v756_v20, %v755_v11  ;;  %v765_v11 = vld [vmem:[#allocation2 + $0xd9] sm:$0xff] }
  0x4e   : > { %4719 = vmatprep.subr.bf16.mxu1 %v5177_v42  ;;  %4767 = vmatprep.subr.bf16.mxu0 %v5178_v43  ;;  %v768_v20 = vld [vmem:[#allocation2 + $0xf9] sm:$0xff] }
  0x4f   : > { %4721 = vmatprep.mubr.bf16.mxu1 %v779_v45  ;;  %4769 = vmatprep.mubr.bf16.mxu0 %v1149_v46  ;;  %339 = vst [vmem:[#allocation2 + $0x178] sm:$0x3] %v285_v30  ;;  %v5187_v45 = vld [vmem:[%s6402_s1 + $0xd8] sm:$0xff]   ;;  %v4425_v24 = vld [vmem:[%s5378_s7 + $0xc0] sm:$0xff]  }
  0x50   : > { %v5188_v46 = vld [vmem:[%s6402_s1 + $0x118] sm:$0xff]   ;;  %v4336_v30 = vunpack.c.l.bf16 %v4425_v24 }
  0x51   : > { %4720 = vmatpush3.bf16.msra.mxu1 %v5177_v42  ;;  %4768 = vmatpush3.bf16.msra.mxu0 %v5178_v43  ;;  %v1129_v42 = vld [vmem:[#allocation2 + $0x92] sm:$0xff] }
  0x52   : > { %4801 = vmatprep.subr.bf16.mxu1 %v5179_v51  ;;  %4849 = vmatprep.subr.bf16.mxu0 %v5180_v52  ;;  %v760_v43 = vld [vmem:[#allocation2 + $0x99] sm:$0xff]  ;;  %v5598_v50 = vpack.c.bf16 %v1130_v44, %v1129_v42  ;;  %340 = vst [vmem:[#allocation2 + $0x180] sm:$0xff] %v4336_v30  ;;  %v1139_v44 = vld [vmem:[#allocation2 + $0x10a] sm:$0xff] }
  0x53   : > { %v5596_v49 = vpack.c.bf16 %v760_v43, %v759_v41  ;;  %v5650_v41 = vpack.c.bf16 %v768_v20, %v767_v19  ;;  %v769_v43 = vld [vmem:[#allocation2 + $0x109] sm:$0xff] }
  0x54   : > { %4722 = vmatmul.mubr.bf16.vlgmr.msra.gmra.mxu1 %v5541_v0  ;;  %4770 = vmatmul.mubr.bf16.vlgmr.msra.gmra.mxu0 %v5543_v1 }
  0x55   : > { %4802 = vmatpush3.bf16.msra.mxu1 %v5179_v51  ;;  %4850 = vmatpush3.bf16.msra.mxu0 %v5180_v52  ;;  %v5189_v51 = vld [vmem:[%s6402_s1 + $0xd0] sm:$0xff]  }
  0x56   : > { %4725 = vmatprep.mubr.bf16.mxu1 %v5546_v4  ;;  %4773 = vmatprep.mubr.bf16.mxu0 %v5548_v5  ;;  %v761_v52 = vld [vmem:[#allocation2 + $0xa9] sm:$0xff]  ;;  %v1148_v30 = vld [vmem:[#allocation2 + $0x172] sm:$0xff] }
  0x57   : > { %4803 = vmatprep.subr.bf16.mxu1 %v5181_v6  ;;  %4851 = vmatprep.subr.bf16.mxu0 %v5182_v10 }
  0x59   : > { %4804 = vmatpush3.bf16.msra.mxu1 %v5181_v6  ;;  %4852 = vmatpush3.bf16.msra.mxu0 %v5182_v10  ;;  %v5616_v6 = vpack.c.bf16 %v762_v59, %v761_v52  ;;  %v5193_v10 = vld [vmem:[%s6402_s1 + $0xc0] sm:$0xff]  }
  0x5a   : > { %4805 = vmatprep.subr.bf16.mxu1 %v5183_v16  ;;  %4853 = vmatprep.subr.bf16.mxu0 %v5184_v22  ;;  %v1141_v52 = vld [vmem:[#allocation2 + $0x122] sm:$0xff] }
  0x5c   : > { %4726 = vmatmul.mubr.bf16.gmra.mxu1 %v5568_v26  ;;  %4774 = vmatmul.mubr.bf16.gmra.mxu0 %v5570_v28 }
  0x5d   : > { %4729 = vmatprep.mubr.bf16.mxu1 %v5572_v31  ;;  %4777 = vmatprep.mubr.bf16.mxu0 %v5574_v32 }
  0x5e   : > { %4806 = vmatpush3.bf16.msra.mxu1 %v5183_v16  ;;  %4854 = vmatpush3.bf16.msra.mxu0 %v5184_v22  ;;  %v1135_v16 = vld [vmem:[#allocation2 + $0xda] sm:$0xff] }
  0x5f   : > { %4807 = vmatprep.subr.bf16.mxu1 %v5185_v33  ;;  %4855 = vmatprep.subr.bf16.mxu0 %v5186_v37  ;;  %v1138_v22 = vld [vmem:[#allocation2 + $0xfa] sm:$0xff]  ;;  %v5648_v38 = vpack.c.bf16 %v1136_v17, %v1135_v16  ;;  %v5672_v17 = vpack.c.bf16 %v774_v62, %v773_v61  ;;  %v1508_v61 = vld [vmem:[#allocation2 + $0x108] sm:$0xff]  ;;  %v1509_v62 = vld [vmem:[#allocation2 + $0x110] sm:$0xff] }
  0x60   : > { %v5652_v42 = vpack.c.bf16 %v1138_v22, %v1137_v21  ;;  %v1146_v16 = vld [vmem:[#allocation2 + $0x15a] sm:$0xff]  ;;  %v777_v21 = vld [vmem:[#allocation2 + $0x169] sm:$0xff]  ;;  %v778_v22 = vld [vmem:[#allocation2 + $0x171] sm:$0xff] }
  0x61   : > { %v5687_v34 = vpack.c.bf16 %v778_v22, %v777_v21 }
  0x62   : > { %4808 = vmatpush3.bf16.msra.mxu1 %v5185_v33  ;;  %4856 = vmatpush3.bf16.msra.mxu0 %v5186_v37  ;;  %v4337_v33 = vunpack.c.h.bf16 %v4425_v24  ;;  %v5646_v37 = vpack.c.bf16 %v766_v13, %v765_v11  ;;  %v1145_v11 = vld [vmem:[#allocation2 + $0x152] sm:$0xff]  ;;  %v1147_v24 = vld [vmem:[#allocation2 + $0x16a] sm:$0xff] }
  0x63   : > { %4809 = vmatprep.subr.bf16.mxu1 %v5187_v45  ;;  %4857 = vmatprep.subr.bf16.mxu0 %v5188_v46  ;;  %v776_v13 = vld [vmem:[#allocation2 + $0x159] sm:$0xff]  ;;  %v5678_v20 = vpack.c.bf16 %v1146_v16, %v1145_v11  ;;  %v5689_v36 = vpack.c.bf16 %v1148_v30, %v1147_v24  ;;  %v5214_v24 = vld [vmem:[%s6402_s1 + $0x1f0] sm:$0xff]  }
  0x64   : > { %4730 = vmatmul.mubr.bf16.gmra.mxu1 %v5592_v47  ;;  %4778 = vmatmul.mubr.bf16.gmra.mxu0 %v5594_v48  ;;  %341 = vst [vmem:[#allocation2 + $0x188] sm:$0xff] %v4337_v33  ;;  %v5685_v33 = vld [vmem:[%s5378_s7 + $0xcc] sm:$0xff]  }
  0x65   : > { %4733 = vmatprep.mubr.bf16.mxu1 %v5596_v49  ;;  %4781 = vmatprep.mubr.bf16.mxu0 %v5598_v50  ;;  %v5215_v30 = vld [vmem:[%s6402_s1 + $0x230] sm:$0xff]  }
  0x66   : > { %4810 = vmatpush3.bf16.msra.mxu1 %v5187_v45  ;;  %4858 = vmatpush3.bf16.msra.mxu0 %v5188_v46  ;;  %v770_v45 = vld [vmem:[#allocation2 + $0x111] sm:$0xff] }
  0x67   : > { %4811 = vmatprep.subr.bf16.mxu1 %v5189_v51  ;;  %4859 = vmatprep.subr.bf16.mxu0 %v5190_v56  ;;  %v1140_v46 = vld [vmem:[#allocation2 + $0x112] sm:$0xff]  ;;  %v5660_v57 = vpack.c.bf16 %v770_v45, %v769_v43  ;;  %v289_v43 = vunpack.c.l.bf16 %v5685_v33 }
  0x68   : > { %v5662_v58 = vpack.c.bf16 %v1140_v46, %v1139_v44  ;;  %v290_v44 = vunpack.c.h.bf16 %v5685_v33  ;;  %v5197_v45 = vld [vmem:[%s6402_s1 + $0x170] sm:$0xff]  }
  0x69   : > { %343 = vst [vmem:[#allocation2 + $0x198] sm:$0xff] %v289_v43  ;;  %v5198_v46 = vld [vmem:[%s6402_s1 + $0x1b0] sm:$0xff]  }
  0x6a   : > { %4812 = vmatpush3.bf16.msra.mxu1 %v5189_v51  ;;  %4860 = vmatpush3.bf16.msra.mxu0 %v5190_v56  ;;  %v771_v51 = vld [vmem:[#allocation2 + $0x121] sm:$0xff]  ;;  %v1142_v56 = vld [vmem:[#allocation2 + $0x12a] sm:$0xff]  ;;  %344 = vst [vmem:[#allocation2 + $0x1a0] sm:$0xff] %v290_v44  ;;  %v2608_v44 = vld [vmem:[#allocation2 + $0x98] sm:$0xff] }
  0x6b   : > { %4813 = vmatprep.subr.bf16.mxu1 %v5191_v2  ;;  %4861 = vmatprep.subr.bf16.mxu0 %v5192_v3  ;;  %v5664_v59 = vpack.c.bf16 %v772_v55, %v771_v51  ;;  %v5666_v60 = vpack.c.bf16 %v1142_v56, %v1141_v52  ;;  %v5207_v51 = vld [vmem:[%s6402_s1 + $0x148] sm:$0xff]   ;;  %v5211_v52 = vld [vmem:[%s6402_s1 + $0x180] sm:$0xff]   ;;  %v1506_v55 = vld [vmem:[#allocation2 + $0xf0] sm:$0xff] }
  0x6c   : > { %4734 = vmatmul.mubr.bf16.gmra.mxu1 %v5616_v6  ;;  %4782 = vmatmul.mubr.bf16.gmra.mxu0 %v5618_v7  ;;  %v1507_v56 = vld [vmem:[#allocation2 + $0xf8] sm:$0xff]  ;;  %v2607_v43 = vld [vmem:[#allocation2 + $0x90] sm:$0xff] }
  0x6d   : > { %4737 = vmatprep.mubr.bf16.mxu1 %v5620_v8  ;;  %4785 = vmatprep.mubr.bf16.mxu0 %v5622_v9 }
  0x6e   : > { %4814 = vmatpush3.bf16.msra.mxu1 %v5191_v2  ;;  %4862 = vmatpush3.bf16.msra.mxu0 %v5192_v3  ;;  %v1143_v2 = vld [vmem:[#allocation2 + $0x13a] sm:$0xff]  ;;  %v1144_v3 = vld [vmem:[#allocation2 + $0x142] sm:$0xff] }
  0x6f   : > { %4815 = vmatprep.subr.bf16.mxu1 %v5193_v10  ;;  %4863 = vmatprep.subr.bf16.mxu0 %v5194_v18 }
  0x72   : > { %4816 = vmatpush3.bf16.msra.mxu1 %v5193_v10  ;;  %4864 = vmatpush3.bf16.msra.mxu0 %v5194_v18  ;;  %v775_v10 = vld [vmem:[#allocation2 + $0x151] sm:$0xff]  ;;  %v5674_v18 = vpack.c.bf16 %v1144_v3, %v1143_v2  ;;  %v5767_v3 = vpack.c.bf16 %v1507_v56, %v1506_v55 }
  0x73   : > { %4897 = vmatprep.subr.bf16.mxu1 %v5637_v23  ;;  %4945 = vmatprep.subr.bf16.mxu0 %v5644_v35  ;;  %v5676_v19 = vpack.c.bf16 %v776_v13, %v775_v10  ;;  %v5212_v2 = vld [vmem:[%s6402_s1 + $0x1f8] sm:$0xff]   ;;  %v237_v10 = vld [vmem:[%s5378_s7 + $0xd4] sm:$0x1] }
  0x74   : > { %4738 = vmatmul.mubr.bf16.gmra.mxu1 %v5646_v37  ;;  %4786 = vmatmul.mubr.bf16.gmra.mxu0 %v5648_v38  ;;  %v291_v11 = vunpack.c.l.bf16 %v237_v10  ;;  %v2600_v13 = vld [vmem:[#allocation2 + $0x38] sm:$0xff] }
  0x75   : > { %4741 = vmatprep.mubr.bf16.mxu1 %v5650_v41  ;;  %4789 = vmatprep.mubr.bf16.mxu0 %v5652_v42 }
  0x76   : > { %345 = vst [vmem:[#allocation2 + $0x1a8] sm:$0x3] %v291_v11 }
  0x7c   : > { %4742 = vmatmul.mubr.bf16.gmra.mxu1 %v5660_v57  ;;  %4790 = vmatmul.mubr.bf16.gmra.mxu0 %v5662_v58 }
  0x7d   : > { %4745 = vmatprep.mubr.bf16.mxu1 %v5664_v59  ;;  %4793 = vmatprep.mubr.bf16.mxu0 %v5666_v60 }
  0x84   : > { %4746 = vmatmul.mubr.bf16.gmra.mxu1 %v5672_v17  ;;  %4794 = vmatmul.mubr.bf16.gmra.mxu0 %v5674_v18 }
  0x85   : > { %4749 = vmatprep.mubr.bf16.mxu1 %v5676_v19  ;;  %4797 = vmatprep.mubr.bf16.mxu0 %v5678_v20 }
  0x8c   : > { %4750 = vmatmul.mubr.bf16.gmra.mxu1 %v5687_v34  ;;  %4798 = vmatmul.mubr.bf16.gmra.mxu0 %v5689_v36 }
  0x8d   : > { %4817 = vmatprep.mubr.bf16.mxu1 %v5388_v12  ;;  %4865 = vmatprep.mubr.bf16.mxu0 %v5541_v0  ;;  %v5199_v12 = vld [vmem:[%s6402_s1 + $0x168] sm:$0xff]  }
  0x8e   : > { %v5200_v0 = vld [vmem:[%s6402_s1 + $0x1a8] sm:$0xff]  }
  0x94   : > { %4818 = vmatmul.mubr.bf16.vlgmr.msra.gmra.mxu1 %v5459_v63  ;;  %4866 = vmatmul.mubr.bf16.vlgmr.msra.gmra.mxu0 %v5546_v4  ;;  %v5202_v63 = vld [vmem:[%s6402_s1 + $0x1a0] sm:$0xff]   ;;  %v5203_v4 = vld [vmem:[%s6402_s1 + $0x158] sm:$0xff]  }
  0x95   : > { %4898 = vmatpush3.bf16.msra.mxu1 %v5637_v23  ;;  %4946 = vmatpush3.bf16.msra.mxu0 %v5644_v35  ;;  %v1504_v23 = vld [vmem:[#allocation2 + $0xd8] sm:$0xff]  ;;  %v1505_v35 = vld [vmem:[#allocation2 + $0xe0] sm:$0xff] }
  0x96   : > { %4821 = vmatprep.mubr.bf16.mxu1 %v5403_v25  ;;  %4869 = vmatprep.mubr.bf16.mxu0 %v5568_v26  ;;  %v5201_v25 = vld [vmem:[%s6402_s1 + $0x160] sm:$0xff]   ;;  %v5204_v26 = vld [vmem:[%s6402_s1 + $0x198] sm:$0xff]  }
  0x97   : > { %4899 = vmatprep.subr.bf16.mxu1 %v5197_v45  ;;  %4947 = vmatprep.subr.bf16.mxu0 %v5198_v46 }
  0x99   : > { %4900 = vmatpush3.bf16.msra.mxu1 %v5197_v45  ;;  %4948 = vmatpush3.bf16.msra.mxu0 %v5198_v46  ;;  %v5216_v45 = vld [vmem:[%s6402_s1 + $0x1e8] sm:$0xff]  }
  0x9a   : > { %4901 = vmatprep.subr.bf16.mxu1 %v5199_v12  ;;  %4949 = vmatprep.subr.bf16.mxu0 %v5200_v0  ;;  %v5217_v46 = vld [vmem:[%s6402_s1 + $0x228] sm:$0xff]  }
  0x9c   : > { %4822 = vmatmul.mubr.bf16.gmra.mxu1 %v5482_v14  ;;  %4870 = vmatmul.mubr.bf16.gmra.mxu0 %v5572_v31  ;;  %v5206_v14 = vld [vmem:[%s6402_s1 + $0x190] sm:$0xff]   ;;  %v1502_v31 = vld [vmem:[#allocation2 + $0xc0] sm:$0xff] }
  0x9d   : > { %4825 = vmatprep.mubr.bf16.mxu1 %v5421_v39  ;;  %4873 = vmatprep.mubr.bf16.mxu0 %v5592_v47  ;;  %v5205_v39 = vld [vmem:[%s6402_s1 + $0x150] sm:$0xff]   ;;  %v1503_v47 = vld [vmem:[#allocation2 + $0xc8] sm:$0xff] }
  0x9e   : > { %4902 = vmatpush3.bf16.msra.mxu1 %v5199_v12  ;;  %4950 = vmatpush3.bf16.msra.mxu0 %v5200_v0  ;;  %v2635_v12 = vpack.c.bf16 %v2608_v44, %v2607_v43  ;;  %v5219_v0 = vld [vmem:[%s6402_s1 + $0x220] sm:$0xff]  }
  0x9f   : > { %4903 = vmatprep.subr.bf16.mxu1 %v5201_v25  ;;  %4951 = vmatprep.subr.bf16.mxu0 %v5202_v63 }
  0xa2   : > { %4904 = vmatpush3.bf16.msra.mxu1 %v5201_v25  ;;  %4952 = vmatpush3.bf16.msra.mxu0 %v5202_v63  ;;  %v2609_v25 = vld [vmem:[#allocation2 + $0xa8] sm:$0xff]  ;;  %v2610_v63 = vld [vmem:[#allocation2 + $0xb0] sm:$0xff] }
  0xa3   : > { %4905 = vmatprep.subr.bf16.mxu1 %v5203_v4  ;;  %4953 = vmatprep.subr.bf16.mxu0 %v5204_v26 }
  0xa4   : > { %4826 = vmatmul.mubr.bf16.gmra.mxu1 %v5507_v27  ;;  %4874 = vmatmul.mubr.bf16.gmra.mxu0 %v5596_v49  ;;  %v5208_v27 = vld [vmem:[%s6402_s1 + $0x188] sm:$0xff]   ;;  %v5747_v49 = vpack.c.bf16 %v1503_v47, %v1502_v31  ;;  %v2619_v47 = vld [vmem:[#allocation2 + $0x120] sm:$0xff] }
  0xa5   : > { %4829 = vmatprep.mubr.bf16.mxu1 %v5439_v53  ;;  %4877 = vmatprep.mubr.bf16.mxu0 %v5616_v6  ;;  %v5749_v53 = vpack.c.bf16 %v1505_v35, %v1504_v23  ;;  %v5210_v6 = vld [vmem:[%s6402_s1 + $0x140] sm:$0xff]   ;;  %v5225_v31 = vld [vmem:[%s6402_s1 + $0x208] sm:$0xff]  }
  0xa6   : > { %4906 = vmatpush3.bf16.msra.mxu1 %v5203_v4  ;;  %4954 = vmatpush3.bf16.msra.mxu0 %v5204_v26  ;;  %v5220_v4 = vld [vmem:[%s6402_s1 + $0x1d8] sm:$0xff]   ;;  %v2620_v23 = vld [vmem:[#allocation2 + $0x128] sm:$0xff] }
  0xa7   : > { %4907 = vmatprep.subr.bf16.mxu1 %v5205_v39  ;;  %4955 = vmatprep.subr.bf16.mxu0 %v5206_v14  ;;  %v5221_v26 = vld [vmem:[%s6402_s1 + $0x218] sm:$0xff]   ;;  %v2641_v35 = vpack.c.bf16 %v2620_v23, %v2619_v47 }
  0xaa   : > { %4908 = vmatpush3.bf16.msra.mxu1 %v5205_v39  ;;  %4956 = vmatpush3.bf16.msra.mxu0 %v5206_v14  ;;  %v2636_v39 = vpack.c.bf16 %v2610_v63, %v2609_v25  ;;  %v5224_v14 = vld [vmem:[%s6402_s1 + $0x1c8] sm:$0xff]  }
  0xab   : > { %4909 = vmatprep.subr.bf16.mxu1 %v5207_v51  ;;  %4957 = vmatprep.subr.bf16.mxu0 %v5208_v27  ;;  %v2973_v25 = vld [vmem:[#allocation2 + $0x61] sm:$0xff] }
  0xac   : > { %4830 = vmatmul.mubr.bf16.gmra.mxu1 %v5747_v49  ;;  %4878 = vmatmul.mubr.bf16.gmra.mxu0 %v5620_v8  ;;  %v5213_v8 = vld [vmem:[%s6402_s1 + $0x238] sm:$0xff]  }
  0xad   : > { %4833 = vmatprep.mubr.bf16.mxu1 %v5749_v53  ;;  %4881 = vmatprep.mubr.bf16.mxu0 %v5646_v37  ;;  %v5769_v37 = vpack.c.bf16 %v1509_v62, %v1508_v61 }
  0xae   : > { %4910 = vmatpush3.bf16.msra.mxu1 %v5207_v51  ;;  %4958 = vmatpush3.bf16.msra.mxu0 %v5208_v27 }
  0xaf   : > { %4911 = vmatprep.subr.bf16.mxu1 %v5210_v6  ;;  %4959 = vmatprep.subr.bf16.mxu0 %v5211_v52 }
  0xb2   : > { %4912 = vmatpush3.bf16.msra.mxu1 %v5210_v6  ;;  %4960 = vmatpush3.bf16.msra.mxu0 %v5211_v52  ;;  %v2623_v6 = vld [vmem:[#allocation2 + $0x150] sm:$0xff]  ;;  %v2624_v52 = vld [vmem:[#allocation2 + $0x158] sm:$0xff] }
  0xb3   : > { %4993 = vmatprep.subr.bf16.mxu1 %v5212_v2  ;;  %5041 = vmatprep.subr.bf16.mxu0 %v5213_v8  ;;  %v2643_v62 = vpack.c.bf16 %v2624_v52, %v2623_v6  ;;  %v2976_v6 = vld [vmem:[#allocation2 + $0x81] sm:$0xff] }
  0xb4   : > { %4834 = vmatmul.mubr.bf16.gmra.mxu1 %v5767_v3  ;;  %4882 = vmatmul.mubr.bf16.gmra.mxu0 %v5650_v41  ;;  %v1888_v41 = vld [vmem:[#allocation2 + $0x181] sm:$0xff] }
  0xb5   : > { %4837 = vmatprep.mubr.bf16.mxu1 %v5769_v37  ;;  %4885 = vmatprep.mubr.bf16.mxu0 %v5660_v57  ;;  %v1889_v57 = vld [vmem:[#allocation2 + $0x189] sm:$0xff] }
  0xbc   : > { %4838 = vmatmul.mubr.bf16.gmra.mxu1 %v5485_v15  ;;  %4886 = vmatmul.mubr.bf16.gmra.mxu0 %v5664_v59  ;;  %v2599_v15 = vld [vmem:[#allocation2 + $0x30] sm:$0xff]  ;;  %v5785_v59 = vld [vmem:[%s5378_s7 + $0xc0] sm:$0xff] }
  0xbd   : > { %4841 = vmatprep.mubr.bf16.mxu1 %v5424_v40  ;;  %4889 = vmatprep.mubr.bf16.mxu0 %v5672_v17  ;;  %v5787_v40 = vpack.c.bf16 %v1889_v57, %v1888_v41  ;;  %v2631_v16 = vpack.c.bf16 %v2600_v13, %v2599_v15  ;;  %v2603_v17 = vld [vmem:[#allocation2 + $0x60] sm:$0xff] }
  0xc4   : > { %4842 = vmatmul.mubr.bf16.gmra.mxu1 %v5510_v29  ;;  %4890 = vmatmul.mubr.bf16.gmra.mxu0 %v5676_v19  ;;  %v2601_v29 = vld [vmem:[#allocation2 + $0x48] sm:$0xff] }
  0xc5   : > { %4845 = vmatprep.mubr.bf16.mxu1 %v5442_v54  ;;  %4893 = vmatprep.mubr.bf16.mxu0 %v5687_v34  ;;  %v2602_v54 = vld [vmem:[#allocation2 + $0x50] sm:$0xff]  ;;  %v2604_v19 = vld [vmem:[#allocation2 + $0x68] sm:$0xff]  ;;  %v2606_v34 = vld [vmem:[#allocation2 + $0x80] sm:$0xff] }
  0xc6   : > { %v2632_v21 = vpack.c.bf16 %v2602_v54, %v2601_v29  ;;  %v2633_v22 = vpack.c.bf16 %v2604_v19, %v2603_v17  ;;  %v2259_v54 = vld [vmem:[#allocation2 + $0x18a] sm:$0xff] }
  0xc7   : > { %v2969_v17 = vld [vmem:[#allocation2 + $0x31] sm:$0xff] }
  0xcc   : > { %4846 = vmatmul.mubr.bf16.gmra.mxu1 %v5785_v59  ;;  %4894 = vmatmul.mubr.bf16.gmra.mxu0 %v5787_v40 }
  0xcd   : > { %4913 = vmatprep.mubr.bf16.mxu1 %v5543_v1  ;;  %4961 = vmatprep.mubr.bf16.mxu0 %v2631_v16  ;;  %v2605_v1 = vld [vmem:[#allocation2 + $0x78] sm:$0xff] }
  0xd4   : > { %4914 = vmatmul.mubr.bf16.vlgmr.msra.gmra.mxu1 %v5548_v5  ;;  %4962 = vmatmul.mubr.bf16.vlgmr.msra.gmra.mxu0 %v2632_v21  ;;  %v2634_v5 = vpack.c.bf16 %v2606_v34, %v2605_v1 }
  0xd5   : > { %4994 = vmatpush3.bf16.msra.mxu1 %v5212_v2  ;;  %5042 = vmatpush3.bf16.msra.mxu0 %v5213_v8 }
  0xd6   : > { %4917 = vmatprep.mubr.bf16.mxu1 %v5570_v28  ;;  %4965 = vmatprep.mubr.bf16.mxu0 %v2633_v22  ;;  %v5218_v28 = vld [vmem:[%s6402_s1 + $0x1e0] sm:$0xff]  }
  0xd7   : > { %4995 = vmatprep.subr.bf16.mxu1 %v5214_v24  ;;  %5043 = vmatprep.subr.bf16.mxu0 %v5215_v30  ;;  %v2970_v22 = vld [vmem:[#allocation2 + $0x39] sm:$0xff] }
  0xd8   : > { %v3001_v43 = vpack.c.bf16 %v2970_v22, %v2969_v17  ;;  %v3348_v17 = vld [vmem:[#allocation2 + $0x9a] sm:$0xff] }
  0xd9   : > { %4996 = vmatpush3.bf16.msra.mxu1 %v5214_v24  ;;  %5044 = vmatpush3.bf16.msra.mxu0 %v5215_v30  ;;  %v3339_v24 = vld [vmem:[#allocation2 + $0x32] sm:$0xff]  ;;  %v3340_v30 = vld [vmem:[#allocation2 + $0x3a] sm:$0xff] }
  0xda   : > { %4997 = vmatprep.subr.bf16.mxu1 %v5216_v45  ;;  %5045 = vmatprep.subr.bf16.mxu0 %v5217_v46 }
  0xdc   : > { %4918 = vmatmul.mubr.bf16.gmra.mxu1 %v5574_v32  ;;  %4966 = vmatmul.mubr.bf16.gmra.mxu0 %v2634_v5  ;;  %v5222_v32 = vld [vmem:[%s6402_s1 + $0x1d0] sm:$0xff]  }
  0xdd   : > { %4921 = vmatprep.mubr.bf16.mxu1 %v5594_v48  ;;  %4969 = vmatprep.mubr.bf16.mxu0 %v2635_v12  ;;  %v5223_v48 = vld [vmem:[%s6402_s1 + $0x210] sm:$0xff]  }
  0xde   : > { %4998 = vmatpush3.bf16.msra.mxu1 %v5216_v45  ;;  %5046 = vmatpush3.bf16.msra.mxu0 %v5217_v46  ;;  %v2971_v5 = vld [vmem:[#allocation2 + $0x49] sm:$0xff]  ;;  %v2972_v12 = vld [vmem:[#allocation2 + $0x51] sm:$0xff] }
  0xdf   : > { %4999 = vmatprep.subr.bf16.mxu1 %v5218_v28  ;;  %5047 = vmatprep.subr.bf16.mxu0 %v5219_v0 }
  0xe2   : > { %5000 = vmatpush3.bf16.msra.mxu1 %v5218_v28  ;;  %5048 = vmatpush3.bf16.msra.mxu0 %v5219_v0  ;;  %v3341_v28 = vld [vmem:[#allocation2 + $0x4a] sm:$0xff]  ;;  %v3342_v0 = vld [vmem:[#allocation2 + $0x52] sm:$0xff] }
  0xe3   : > { %5001 = vmatprep.subr.bf16.mxu1 %v5220_v4  ;;  %5049 = vmatprep.subr.bf16.mxu0 %v5221_v26 }
  0xe4   : > { %4922 = vmatmul.mubr.bf16.gmra.mxu1 %v5598_v50  ;;  %4970 = vmatmul.mubr.bf16.gmra.mxu0 %v2636_v39  ;;  %v5226_v50 = vld [vmem:[%s6402_s1 + $0x1c0] sm:$0xff]  }
  0xe5   : > { %4925 = vmatprep.mubr.bf16.mxu1 %v5618_v7  ;;  %4973 = vmatprep.mubr.bf16.mxu0 %v5747_v49  ;;  %v5227_v7 = vld [vmem:[%s6402_s1 + $0x200] sm:$0xff]  }
  0xe6   : > { %5002 = vmatpush3.bf16.msra.mxu1 %v5220_v4  ;;  %5050 = vmatpush3.bf16.msra.mxu0 %v5221_v26  ;;  %v2974_v26 = vld [vmem:[#allocation2 + $0x69] sm:$0xff] }
  0xe7   : > { %5003 = vmatprep.subr.bf16.mxu1 %v5222_v32  ;;  %5051 = vmatprep.subr.bf16.mxu0 %v5223_v48  ;;  %v3343_v39 = vld [vmem:[#allocation2 + $0x62] sm:$0xff] }
  0xea   : > { %5004 = vmatpush3.bf16.msra.mxu1 %v5222_v32  ;;  %5052 = vmatpush3.bf16.msra.mxu0 %v5223_v48  ;;  %v3344_v32 = vld [vmem:[#allocation2 + $0x6a] sm:$0xff] }
  0xeb   : > { %5005 = vmatprep.subr.bf16.mxu1 %v5224_v14  ;;  %5053 = vmatprep.subr.bf16.mxu0 %v5225_v31 }
  0xec   : > { %4926 = vmatmul.mubr.bf16.gmra.mxu1 %v5622_v9  ;;  %4974 = vmatmul.mubr.bf16.gmra.mxu0 %v5749_v53  ;;  %v2621_v9 = vld [vmem:[#allocation2 + $0x138] sm:$0xff] }
  0xed   : > { %4929 = vmatprep.mubr.bf16.mxu1 %v5648_v38  ;;  %4977 = vmatprep.mubr.bf16.mxu0 %v5767_v3  ;;  %v2622_v38 = vld [vmem:[#allocation2 + $0x140] sm:$0xff]  ;;  %v2625_v3 = vld [vmem:[#allocation2 + $0x168] sm:$0xff] }
  0xee   : > { %5006 = vmatpush3.bf16.msra.mxu1 %v5224_v14  ;;  %5054 = vmatpush3.bf16.msra.mxu0 %v5225_v31  ;;  %v2642_v61 = vpack.c.bf16 %v2622_v38, %v2621_v9  ;;  %v3002_v31 = vpack.c.bf16 %v2972_v12, %v2971_v5  ;;  %v2975_v38 = vld [vmem:[#allocation2 + $0x79] sm:$0xff] }
  0xef   : > { %5007 = vmatprep.subr.bf16.mxu1 %v5226_v50  ;;  %5055 = vmatprep.subr.bf16.mxu0 %v5227_v7 }
  0xf2   : > { %5008 = vmatpush3.bf16.msra.mxu1 %v5226_v50  ;;  %5056 = vmatpush3.bf16.msra.mxu0 %v5227_v7  ;;  %v3003_v50 = vpack.c.bf16 %v2974_v26, %v2973_v25  ;;  %v3373_v7 = vpack.c.bf16 %v3344_v32, %v3343_v39 }
  0xf4   : > { %v5845_v51 = vpop.f32.mrf.mxu0  ;;  %v5847_v27 = vpop.f32.mrf.mxu1  ;;  %4930 = vmatmul.mubr.bf16.gmra.mxu1 %v5652_v42  ;;  %4978 = vmatmul.mubr.bf16.gmra.mxu0 %v5769_v37  ;;  %v2626_v37 = vld [vmem:[#allocation2 + $0x170] sm:$0xff] }
  0xf5   : > { %4933 = vmatprep.mubr.bf16.mxu1 %v5662_v58  ;;  %4981 = vmatprep.mubr.bf16.mxu0 %v2641_v35  ;;  %v2644_v15 = vpack.c.bf16 %v2626_v37, %v2625_v3  ;;  %v2977_v3 = vld [vmem:[#allocation2 + $0x91] sm:$0xff] }
  0xf6   : > { %v5852_v49 = vpop.f32.mrf.mxu0  ;;  %v5854_v53 = vpop.f32.mrf.mxu1 }
  0xf8   : > { %v5856_v55 = vpop.f32.mrf.mxu0  ;;  %v5858_v56 = vpop.f32.mrf.mxu1 }
  0xfa   : > { %v5860_v42 = vpop.f32.mrf.mxu0  ;;  %v5862_v2 = vpop.f32.mrf.mxu1 }
  0xfc   : > { %v5864_v58 = vpop.f32.mrf.mxu0  ;;  %v5866_v8 = vpop.f32.mrf.mxu1  ;;  %4934 = vmatmul.mubr.bf16.gmra.mxu1 %v5666_v60  ;;  %4982 = vmatmul.mubr.bf16.gmra.mxu0 %v2642_v61  ;;  %v3345_v61 = vld [vmem:[#allocation2 + $0x7a] sm:$0xff] }
  0xfd   : > { %4937 = vmatprep.mubr.bf16.mxu1 %v5674_v18  ;;  %4985 = vmatprep.mubr.bf16.mxu0 %v2643_v62  ;;  %v2258_v18 = vld [vmem:[#allocation2 + $0x182] sm:$0xff] }
  0xfe   : > { %v5870_v10 = vpop.f32.mrf.mxu0  ;;  %v5872_v11 = vpop.f32.mrf.mxu1  ;;  %v3346_v62 = vld [vmem:[#allocation2 + $0x82] sm:$0xff] }
  0xff   : > { %v3374_v5 = vpack.c.bf16 %v3346_v62, %v3345_v61  ;;  %v2982_v61 = vld [vmem:[#allocation2 + $0xc9] sm:$0xff] }
 0x100   : > { %v5874_v41 = vpop.f32.mrf.mxu0  ;;  %v5876_v57 = vpop.f32.mrf.mxu1  ;;  %v3351_v62 = vld [vmem:[#allocation2 + $0xc2] sm:$0xff] }
 0x102   : > { %v5878_v13 = vpop.f32.mrf.mxu0  ;;  %v5880_v16 = vpop.f32.mrf.mxu1 }
 0x104   : > { %v5882_v60 = vpop.f32.mrf.mxu0  ;;  %v5884_v29 = vpop.f32.mrf.mxu1  ;;  %4938 = vmatmul.mubr.bf16.gmra.mxu1 %v5678_v20  ;;  %4986 = vmatmul.mubr.bf16.gmra.mxu0 %v2644_v15  ;;  %v5897_v20 = vpack.c.bf16 %v2259_v54, %v2258_v18  ;;  %v2978_v18 = vld [vmem:[#allocation2 + $0x99] sm:$0xff] }
 0x105   : > { %4941 = vmatprep.mubr.bf16.mxu1 %v5689_v36  ;;  %4989 = vmatprep.mubr.bf16.mxu0 %v5785_v59  ;;  %v3371_v36 = vpack.c.bf16 %v3340_v30, %v3339_v24  ;;  %v3347_v54 = vld [vmem:[#allocation2 + $0x92] sm:$0xff] }
 0x106   : > { %v5889_v19 = vpop.f32.mrf.mxu0  ;;  %v5891_v21 = vpop.f32.mrf.mxu1 }
 0x108   : > { %v5893_v1 = vpop.f32.mrf.mxu0  ;;  %v5895_v34 = vpop.f32.mrf.mxu1 }
 0x10a   : > { %v5899_v44 = vpop.f32.mrf.mxu0  ;;  %v5901_v59 = vpop.f32.mrf.mxu1 }
 0x10c   : > { %v5903_v45 = vpop.f32.mrf.mxu0  ;;  %v5905_v46 = vpop.f32.mrf.mxu1  ;;  %4942 = vmatmul.mubr.bf16.gmra.mxu1 %v5897_v20  ;;  %4990 = vmatmul.mubr.bf16.gmra.mxu0 %v5685_v33  ;;  %v3372_v33 = vpack.c.bf16 %v3342_v0, %v3341_v28  ;;  %v3005_v28 = vpack.c.bf16 %v2978_v18, %v2977_v3  ;;  %v3375_v0 = vpack.c.bf16 %v3348_v17, %v3347_v54 }
 0x10d   : > { %5009 = vmatprep.mubr.bf16.mxu1 %v3001_v43  ;;  %5057 = vmatprep.mubr.bf16.mxu0 %v3371_v36  ;;  %v3004_v36 = vpack.c.bf16 %v2976_v6, %v2975_v38  ;;  %v2981_v38 = vld [vmem:[#allocation2 + $0xc1] sm:$0xff] }
 0x10e   : > { %v5909_v63 = vpop.f32.mrf.mxu0  ;;  %v5911_v4 = vpop.f32.mrf.mxu1 }
 0x110   : > { %v5913_v48 = vpop.f32.mrf.mxu0  ;;  %v5915_v14 = vpop.f32.mrf.mxu1 }
 0x112   : > { %v5917_v47 = vpop.f32.mrf.mxu0  ;;  %v5919_v23 = vpop.f32.mrf.mxu1 }
 0x114   : > { %v4723_v35 = vpop.f32.mrf.mxu1  ;;  %v4771_v9 = vpop.f32.mrf.mxu0  ;;  %5010 = vmatmul.mubr.bf16.vlgmr.msra.gmra.mxu1 %v3002_v31  ;;  %5058 = vmatmul.mubr.bf16.vlgmr.msra.gmra.mxu0 %v3372_v33 }
 0x115   : > { %v1055_v52 = vadd.f32 %v4723_v35, %v5845_v51  ;;  %5013 = vmatprep.mubr.bf16.mxu1 %v3003_v50  ;;  %5061 = vmatprep.mubr.bf16.mxu0 %v3373_v7  ;;  %v2980_v50 = vld [vmem:[#allocation2 + $0xb1] sm:$0xff] }
 0x116   : > { %v926_v37 = vpop.f32.mrf.mxu1  ;;  %v1296_v15 = vpop.f32.mrf.mxu0 }
 0x117   : > { %v5922_v22 = vadd.f32 %v4771_v9, %v1055_v52  ;;  %v1053_v24 = vadd.f32 %v926_v37, %v5852_v49  ;;  %v2979_v49 = vld [vmem:[#allocation2 + $0xa9] sm:$0xff]  ;;  %v3350_v9 = vld [vmem:[#allocation2 + $0xb2] sm:$0xff] }
 0x118   : > { %v4724_v30 = vpop.f32.mrf.mxu1  ;;  %v4772_v43 = vpop.f32.mrf.mxu0  ;;  %v3006_v54 = vpack.c.bf16 %v2980_v50, %v2979_v49  ;;  %v2985_v49 = vld [vmem:[#allocation2 + $0xf1] sm:$0xff] }
 0x119   : > { %v5925_v12 = vadd.f32 %v1296_v15, %v1053_v24  ;;  %v1056_v51 = vadd.f32 %v4724_v30, %v5856_v55  ;;  %v3349_v55 = vld [vmem:[#allocation2 + $0xaa] sm:$0xff]  ;;  %v3007_v30 = vpack.c.bf16 %v2982_v61, %v2981_v38 }
 0x11a   : > { %v929_v25 = vpop.f32.mrf.mxu1  ;;  %v1299_v26 = vpop.f32.mrf.mxu0  ;;  %v3376_v17 = vpack.c.bf16 %v3350_v9, %v3349_v55  ;;  %v2986_v55 = vld [vmem:[#allocation2 + $0xf9] sm:$0xff] }
 0x11b   : > { %v5928_v39 = vadd.f32 %v4772_v43, %v1056_v51  ;;  %v1054_v32 = vadd.f32 %v929_v25, %v5860_v42  ;;  %v3352_v42 = vld [vmem:[#allocation2 + $0xca] sm:$0xff]  ;;  %v3355_v9 = vld [vmem:[#allocation2 + $0xf2] sm:$0xff] }
 0x11c   : > { %v4727_v31 = vpop.f32.mrf.mxu1  ;;  %v4775_v33 = vpop.f32.mrf.mxu0  ;;  %5014 = vmatmul.mubr.bf16.gmra.mxu1 %v3004_v36  ;;  %5062 = vmatmul.mubr.bf16.gmra.mxu0 %v3374_v5  ;;  %v3377_v43 = vpack.c.bf16 %v3352_v42, %v3351_v62 }
 0x11d   : > { %v5931_v7 = vadd.f32 %v1299_v26, %v1054_v32  ;;  %v1059_v35 = vadd.f32 %v4727_v31, %v5864_v58  ;;  %5017 = vmatprep.mubr.bf16.mxu1 %v3005_v28  ;;  %5065 = vmatprep.mubr.bf16.mxu0 %v3375_v0  ;;  %v2984_v26 = vld [vmem:[#allocation2 + $0xe1] sm:$0xff] }
 0x11e   : > { %v942_v6 = vpop.f32.mrf.mxu1  ;;  %v1312_v52 = vpop.f32.mrf.mxu0 }
 0x11f   : > { %v5934_v3 = vadd.f32 %v4775_v33, %v1059_v35  ;;  %v1057_v37 = vadd.f32 %v942_v6, %v5870_v10  ;;  %v2983_v10 = vld [vmem:[#allocation2 + $0xd9] sm:$0xff]  ;;  %v3354_v33 = vld [vmem:[#allocation2 + $0xe2] sm:$0xff] }
 0x120   : > { %v4728_v15 = vpop.f32.mrf.mxu1  ;;  %v4776_v18 = vpop.f32.mrf.mxu0  ;;  %v3008_v62 = vpack.c.bf16 %v2984_v26, %v2983_v10  ;;  %v2989_v10 = vld [vmem:[#allocation2 + $0x121] sm:$0xff] }
 0x121   : > { %v5937_v24 = vadd.f32 %v1312_v52, %v1057_v37  ;;  %v1060_v58 = vadd.f32 %v4728_v15, %v5874_v41  ;;  %v3353_v41 = vld [vmem:[#allocation2 + $0xda] sm:$0xff]  ;;  %v3009_v15 = vpack.c.bf16 %v2986_v55, %v2985_v49 }
 0x122   : > { %v945_v36 = vpop.f32.mrf.mxu1  ;;  %v1315_v5 = vpop.f32.mrf.mxu0  ;;  %v3378_v42 = vpack.c.bf16 %v3354_v33, %v3353_v41  ;;  %v2990_v41 = vld [vmem:[#allocation2 + $0x129] sm:$0xff] }
 0x123   : > { %v5940_v51 = vadd.f32 %v4776_v18, %v1060_v58  ;;  %v1058_v28 = vadd.f32 %v945_v36, %v5878_v13  ;;  %v3356_v13 = vld [vmem:[#allocation2 + $0xfa] sm:$0xff]  ;;  %v3359_v33 = vld [vmem:[#allocation2 + $0x122] sm:$0xff] }
 0x124   : > { %v4731_v0 = vpop.f32.mrf.mxu1  ;;  %v4779_v25 = vpop.f32.mrf.mxu0  ;;  %5018 = vmatmul.mubr.bf16.gmra.mxu1 %v3006_v54  ;;  %5066 = vmatmul.mubr.bf16.gmra.mxu0 %v3376_v17  ;;  %v3379_v18 = vpack.c.bf16 %v3356_v13, %v3355_v9 }
 0x125   : > { %v5943_v32 = vadd.f32 %v1315_v5, %v1058_v28  ;;  %v1063_v31 = vadd.f32 %v4731_v0, %v5882_v60  ;;  %5021 = vmatprep.mubr.bf16.mxu1 %v3007_v30  ;;  %5069 = vmatprep.mubr.bf16.mxu0 %v3377_v43  ;;  %v2988_v5 = vld [vmem:[#allocation2 + $0x111] sm:$0xff] }
 0x126   : > { %v958_v50 = vpop.f32.mrf.mxu1  ;;  %v1328_v35 = vpop.f32.mrf.mxu0 }
 0x127   : > { %v5946_v38 = vadd.f32 %v4779_v25, %v1063_v31  ;;  %v1061_v6 = vadd.f32 %v958_v50, %v5889_v19  ;;  %v2987_v19 = vld [vmem:[#allocation2 + $0x109] sm:$0xff]  ;;  %v3358_v25 = vld [vmem:[#allocation2 + $0x112] sm:$0xff] }
 0x128   : > { %v4732_v52 = vpop.f32.mrf.mxu1  ;;  %v4780_v61 = vpop.f32.mrf.mxu0  ;;  %v3010_v9 = vpack.c.bf16 %v2988_v5, %v2987_v19  ;;  %v2993_v19 = vld [vmem:[#allocation2 + $0x151] sm:$0xff] }
 0x129   : > { %v5949_v37 = vadd.f32 %v1328_v35, %v1061_v6  ;;  %v1064_v60 = vadd.f32 %v4732_v52, %v5893_v1  ;;  %v3357_v1 = vld [vmem:[#allocation2 + $0x10a] sm:$0xff]  ;;  %v3011_v52 = vpack.c.bf16 %v2990_v41, %v2989_v10 }
 0x12a   : > { %v961_v54 = vpop.f32.mrf.mxu1  ;;  %v1331_v17 = vpop.f32.mrf.mxu0  ;;  %v3380_v13 = vpack.c.bf16 %v3358_v25, %v3357_v1  ;;  %v2994_v1 = vld [vmem:[#allocation2 + $0x159] sm:$0xff] }
 0x12b   : > { %v5952_v58 = vadd.f32 %v4780_v61, %v1064_v60  ;;  %v1062_v30 = vadd.f32 %v961_v54, %v5899_v44  ;;  %v3360_v44 = vld [vmem:[#allocation2 + $0x12a] sm:$0xff]  ;;  %v3363_v25 = vld [vmem:[#allocation2 + $0x152] sm:$0xff] }
 0x12c   : > { %v4735_v43 = vpop.f32.mrf.mxu1  ;;  %v4783_v36 = vpop.f32.mrf.mxu0  ;;  %5022 = vmatmul.mubr.bf16.gmra.mxu1 %v3008_v62  ;;  %5070 = vmatmul.mubr.bf16.gmra.mxu0 %v3378_v42  ;;  %v3381_v61 = vpack.c.bf16 %v3360_v44, %v3359_v33 }
 0x12d   : > { %v5955_v28 = vadd.f32 %v1331_v17, %v1062_v30  ;;  %v1067_v0 = vadd.f32 %v4735_v43, %v5903_v45  ;;  %5025 = vmatprep.mubr.bf16.mxu1 %v3009_v15  ;;  %5073 = vmatprep.mubr.bf16.mxu0 %v3379_v18  ;;  %v2992_v17 = vld [vmem:[#allocation2 + $0x141] sm:$0xff] }
 0x12e   : > { %v974_v26 = vpop.f32.mrf.mxu1  ;;  %v1344_v31 = vpop.f32.mrf.mxu0 }
 0x12f   : > { %v5958_v49 = vadd.f32 %v4783_v36, %v1067_v0  ;;  %v1065_v50 = vadd.f32 %v974_v26, %v5909_v63  ;;  %v2991_v63 = vld [vmem:[#allocation2 + $0x139] sm:$0xff]  ;;  %v3362_v36 = vld [vmem:[#allocation2 + $0x142] sm:$0xff] }
 0x130   : > { %v4736_v35 = vpop.f32.mrf.mxu1  ;;  %v4784_v55 = vpop.f32.mrf.mxu0  ;;  %v3012_v33 = vpack.c.bf16 %v2992_v17, %v2991_v63 }
 0x131   : > { %v5961_v6 = vadd.f32 %v1344_v31, %v1065_v50  ;;  %v1068_v45 = vadd.f32 %v4736_v35, %v5913_v48  ;;  %v3361_v48 = vld [vmem:[#allocation2 + $0x13a] sm:$0xff]  ;;  %v3013_v35 = vpack.c.bf16 %v2994_v1, %v2993_v19 }
 0x132   : > { %v977_v62 = vpop.f32.mrf.mxu1  ;;  %v1347_v42 = vpop.f32.mrf.mxu0  ;;  %v3382_v44 = vpack.c.bf16 %v3362_v36, %v3361_v48 }
 0x133   : > { %v5964_v60 = vadd.f32 %v4784_v55, %v1068_v45  ;;  %v1066_v15 = vadd.f32 %v977_v62, %v5917_v47  ;;  %v3364_v47 = vld [vmem:[#allocation2 + $0x15a] sm:$0xff] }
 0x134   : > { %v4739_v18 = vpop.f32.mrf.mxu1  ;;  %v4787_v54 = vpop.f32.mrf.mxu0  ;;  %5026 = vmatmul.mubr.bf16.gmra.mxu1 %v3010_v9  ;;  %5074 = vmatmul.mubr.bf16.gmra.mxu0 %v3380_v13  ;;  %v3383_v55 = vpack.c.bf16 %v3364_v47, %v3363_v25 }
 0x135   : > { %v5967_v30 = vadd.f32 %v1347_v42, %v1066_v15  ;;  %v1071_v43 = vadd.f32 %v4739_v18, %v5847_v27  ;;  %5029 = vmatprep.mubr.bf16.mxu1 %v3011_v52  ;;  %5077 = vmatprep.mubr.bf16.mxu0 %v3381_v61  ;;  %v3365_v18 = vld [vmem:[#allocation2 + $0x16a] sm:$0xff] }
 0x136   : > { %v990_v5 = vpop.f32.mrf.mxu1  ;;  %v1360_v0 = vpop.f32.mrf.mxu0 }
 0x137   : > { %v5970_v10 = vadd.f32 %v4787_v54, %v1071_v43  ;;  %v1069_v26 = vadd.f32 %v990_v5, %v5854_v53  ;;  %v2995_v53 = vld [vmem:[#allocation2 + $0x169] sm:$0xff]  ;;  %v3366_v54 = vld [vmem:[#allocation2 + $0x172] sm:$0xff] }
 0x138   : > { %v4740_v31 = vpop.f32.mrf.mxu1  ;;  %v4788_v41 = vpop.f32.mrf.mxu0  ;;  %v3384_v5 = vpack.c.bf16 %v3366_v54, %v3365_v18 }
 0x139   : > { %v5973_v50 = vadd.f32 %v1360_v0, %v1069_v26  ;;  %v1072_v27 = vadd.f32 %v4740_v31, %v5858_v56  ;;  %v2996_v56 = vld [vmem:[#allocation2 + $0x171] sm:$0xff] }
 0x13a   : > { %v993_v9 = vpop.f32.mrf.mxu1  ;;  %v1363_v13 = vpop.f32.mrf.mxu0  ;;  %v3014_v19 = vpack.c.bf16 %v2996_v56, %v2995_v53 }
 0x13b   : > { %v5976_v45 = vadd.f32 %v4788_v41, %v1072_v27  ;;  %v1070_v52 = vadd.f32 %v993_v9, %v5862_v2  ;;  %v3369_v27 = vld [vmem:[#allocation2 + $0x19a] sm:$0xff] }
 0x13c   : > { %v4743_v61 = vpop.f32.mrf.mxu1  ;;  %v4791_v62 = vpop.f32.mrf.mxu0  ;;  %5030 = vmatmul.mubr.bf16.gmra.mxu1 %v3012_v33  ;;  %5078 = vmatmul.mubr.bf16.gmra.mxu0 %v3382_v44  ;;  %v2999_v33 = vld [vmem:[#allocation2 + $0x199] sm:$0xff] }
 0x13d   : > { %v5979_v42 = vadd.f32 %v1363_v13, %v1070_v52  ;;  %v1075_v15 = vadd.f32 %v4743_v61, %v5866_v8  ;;  %5033 = vmatprep.mubr.bf16.mxu1 %v3013_v35  ;;  %5081 = vmatprep.mubr.bf16.mxu0 %v3383_v55  ;;  %v3370_v35 = vld [vmem:[#allocation2 + $0x1a2] sm:$0xff] }
 0x13e   : > { %v1006_v63 = vpop.f32.mrf.mxu1  ;;  %v1376_v17 = vpop.f32.mrf.mxu0  ;;  %v3386_v53 = vpack.c.bf16 %v3370_v35, %v3369_v27 }
 0x13f   : > { %v5982_v43 = vadd.f32 %v4791_v62, %v1075_v15  ;;  %v1073_v2 = vadd.f32 %v1006_v63, %v5872_v11 }
 0x140   : > { %v4744_v48 = vpop.f32.mrf.mxu1  ;;  %v4792_v36 = vpop.f32.mrf.mxu0 }
 0x141   : > { %v5985_v0 = vadd.f32 %v1376_v17, %v1073_v2  ;;  %v1076_v1 = vadd.f32 %v4744_v48, %v5876_v57  ;;  %v3000_v57 = vld [vmem:[#allocation2 + $0x1a1] sm:$0xff] }
 0x142   : > { %v1009_v8 = vpop.f32.mrf.mxu1  ;;  %v1379_v25 = vpop.f32.mrf.mxu0  ;;  %v3016_v62 = vpack.c.bf16 %v3000_v57, %v2999_v33 }
 0x143   : > { %v5988_v47 = vadd.f32 %v4792_v36, %v1076_v1  ;;  %v1074_v26 = vadd.f32 %v1009_v8, %v5880_v16 }
 0x144   : > { %v4747_v31 = vpop.f32.mrf.mxu1  ;;  %v4795_v41 = vpop.f32.mrf.mxu0  ;;  %5034 = vmatmul.mubr.bf16.gmra.mxu1 %v3014_v19  ;;  %5082 = vmatmul.mubr.bf16.gmra.mxu0 %v3384_v5 }
 0x145   : > { %v5991_v11 = vadd.f32 %v1379_v25, %v1074_v26  ;;  %v1079_v44 = vadd.f32 %v4747_v31, %v5884_v29  ;;  %5037 = vmatprep.mubr.bf16.mxu1 %v5787_v40  ;;  %5085 = vmatprep.mubr.bf16.mxu0 %v5897_v20 }
 0x146   : > { %v1022_v55 = vpop.f32.mrf.mxu1  ;;  %v1392_v9 = vpop.f32.mrf.mxu0 }
 0x147   : > { %v5996_v13 = vadd.f32 %v4795_v41, %v1079_v44  ;;  %v1077_v16 = vadd.f32 %v1022_v55, %v5891_v21 }
 0x148   : > { %v4748_v52 = vpop.f32.mrf.mxu1  ;;  %v4796_v61 = vpop.f32.mrf.mxu0 }
 0x149   : > { %v5999_v15 = vadd.f32 %v1392_v9, %v1077_v16  ;;  %v1080_v29 = vadd.f32 %v4748_v52, %v5895_v34 }
 0x14a   : > { %v1025_v40 = vpop.f32.mrf.mxu1  ;;  %v1395_v56 = vpop.f32.mrf.mxu0 }
 0x14b   : > { %v6002_v20 = vadd.f32 %v4796_v61, %v1080_v29  ;;  %v1078_v18 = vadd.f32 %v1025_v40, %v5901_v59 }
 0x14c   : > { %v4751_v54 = vpop.f32.mrf.mxu1  ;;  %v4799_v63 = vpop.f32.mrf.mxu0  ;;  %5038 = vmatmul.mubr.bf16.gmra.mxu1 %v3016_v62  ;;  %5086 = vmatmul.mubr.bf16.gmra.mxu0 %v3386_v53 }
 0x14d   : > { %v6005_v17 = vadd.f32 %v1395_v56, %v1078_v18  ;;  %v1083_v21 = vadd.f32 %v4751_v54, %v5905_v46 }
 0x14e   : > { %v1038_v2 = vpop.f32.mrf.mxu1  ;;  %v1408_v48 = vpop.f32.mrf.mxu0 }
 0x14f   : > { %v6008_v36 = vadd.f32 %v4799_v63, %v1083_v21  ;;  %v1081_v34 = vadd.f32 %v1038_v2, %v5911_v4 }
 0x150   : > { %v4752_v19 = vpop.f32.mrf.mxu1  ;;  %v4800_v5 = vpop.f32.mrf.mxu0 }
 0x151   : > { %v6011_v1 = vadd.f32 %v1408_v48, %v1081_v34  ;;  %v1084_v59 = vadd.f32 %v4752_v19, %v5915_v14 }
 0x152   : > { %v1041_v8 = vpop.f32.mrf.mxu1  ;;  %v1411_v25 = vpop.f32.mrf.mxu0 }
 0x153   : > { %v6014_v26 = vadd.f32 %v4800_v5, %v1084_v59  ;;  %v1082_v31 = vadd.f32 %v1041_v8, %v5919_v23 }
 0x154   : > { %v4819_v41 = vpop.f32.mrf.mxu1  ;;  %v4867_v46 = vpop.f32.mrf.mxu0 }
 0x155   : > { %v6017_v33 = vadd.f32 %v1411_v25, %v1082_v31  ;;  %v1796_v44 = vadd.f32 %v4819_v41, %v5922_v22 }
 0x156   : > { %v1667_v57 = vpop.f32.mrf.mxu1  ;;  %v2037_v4 = vpop.f32.mrf.mxu0 }
 0x157   : > { %v6020_v27 = vadd.f32 %v4867_v46, %v1796_v44  ;;  %v1794_v35 = vadd.f32 %v1667_v57, %v5925_v12 }
 0x158   : > { %v4820_v55 = vpop.f32.mrf.mxu1  ;;  %v4868_v14 = vpop.f32.mrf.mxu0 }
 0x159   : > { %v6023_v9 = vadd.f32 %v2037_v4, %v1794_v35  ;;  %v1797_v16 = vadd.f32 %v4820_v55, %v5928_v39 }
 0x15a   : > { %v1670_v52 = vpop.f32.mrf.mxu1  ;;  %v2040_v23 = vpop.f32.mrf.mxu0 }
 0x15b   : > { %v6026_v61 = vadd.f32 %v4868_v14, %v1797_v16  ;;  %v1795_v62 = vadd.f32 %v1670_v52, %v5931_v7 }
 0x15c   : > { %v4823_v53 = vpop.f32.mrf.mxu1  ;;  %v4871_v22 = vpop.f32.mrf.mxu0 }
 0x15d   : > { %v6029_v29 = vadd.f32 %v2040_v23, %v1795_v62  ;;  %v1800_v40 = vadd.f32 %v4823_v53, %v5934_v3 }
 0x15e   : > { %v1683_v56 = vpop.f32.mrf.mxu1  ;;  %v2053_v12 = vpop.f32.mrf.mxu0 }
 0x15f   : > { %v6032_v18 = vadd.f32 %v4871_v22, %v1800_v40  ;;  %v1798_v54 = vadd.f32 %v1683_v56, %v5937_v24 }
 0x160   : > { %v4824_v63 = vpop.f32.mrf.mxu1  ;;  %v4872_v39 = vpop.f32.mrf.mxu0 }
 0x161   : > { %v6035_v21 = vadd.f32 %v2053_v12, %v1798_v54  ;;  %v1801_v2 = vadd.f32 %v4824_v63, %v5940_v51 }
 0x162   : > { %v1686_v48 = vpop.f32.mrf.mxu1  ;;  %v2056_v7 = vpop.f32.mrf.mxu0 }
 0x163   : > { %v6038_v34 = vadd.f32 %v4872_v39, %v1801_v2  ;;  %v1799_v19 = vadd.f32 %v1686_v48, %v5943_v32 }
 0x164   : > { %v4827_v5 = vpop.f32.mrf.mxu1  ;;  %v4875_v3 = vpop.f32.mrf.mxu0 }
 0x165   : > { %v6041_v59 = vadd.f32 %v2056_v7, %v1799_v19  ;;  %v1804_v8 = vadd.f32 %v4827_v5, %v5946_v38 }
 0x166   : > { %v1699_v25 = vpop.f32.mrf.mxu1  ;;  %v2069_v24 = vpop.f32.mrf.mxu0 }
 0x167   : > { %v6044_v31 = vadd.f32 %v4875_v3, %v1804_v8  ;;  %v1802_v41 = vadd.f32 %v1699_v25, %v5949_v37 }
 0x168   : > { %v4828_v46 = vpop.f32.mrf.mxu1  ;;  %v4876_v51 = vpop.f32.mrf.mxu0 }
 0x169   : > { %v6047_v44 = vadd.f32 %v2069_v24, %v1802_v41  ;;  %v1805_v57 = vadd.f32 %v4828_v46, %v5952_v58 }
 0x16a   : > { %v1702_v4 = vpop.f32.mrf.mxu1  ;;  %v2072_v32 = vpop.f32.mrf.mxu0 }
 0x16b   : > { %v6050_v35 = vadd.f32 %v4876_v51, %v1805_v57  ;;  %v1803_v55 = vadd.f32 %v1702_v4, %v5955_v28 }
 0x16c   : > { %v4831_v14 = vpop.f32.mrf.mxu1  ;;  %v4879_v38 = vpop.f32.mrf.mxu0 }
 0x16d   : > { %v6053_v16 = vadd.f32 %v2072_v32, %v1803_v55  ;;  %v1808_v52 = vadd.f32 %v4831_v14, %v5958_v49 }
 0x16e   : > { %v1715_v23 = vpop.f32.mrf.mxu1  ;;  %v2085_v37 = vpop.f32.mrf.mxu0 }
 0x16f   : > { %v6056_v62 = vadd.f32 %v4879_v38, %v1808_v52  ;;  %v1806_v53 = vadd.f32 %v1715_v23, %v5961_v6 }
 0x170   : > { %v4832_v22 = vpop.f32.mrf.mxu1  ;;  %v4880_v58 = vpop.f32.mrf.mxu0 }
 0x171   : > { %v6059_v40 = vadd.f32 %v2085_v37, %v1806_v53  ;;  %v1809_v56 = vadd.f32 %v4832_v22, %v5964_v60 }
 0x172   : > { %v1718_v12 = vpop.f32.mrf.mxu1  ;;  %v2088_v28 = vpop.f32.mrf.mxu0 }
 0x173   : > { %v6062_v54 = vadd.f32 %v4880_v58, %v1809_v56  ;;  %v1807_v63 = vadd.f32 %v1718_v12, %v5967_v30 }
 0x174   : > { %v4835_v39 = vpop.f32.mrf.mxu1  ;;  %v4883_v49 = vpop.f32.mrf.mxu0 }
 0x175   : > { %v6065_v2 = vadd.f32 %v2088_v28, %v1807_v63  ;;  %v1812_v48 = vadd.f32 %v4835_v39, %v5970_v10 }
 0x176   : > { %v1731_v7 = vpop.f32.mrf.mxu1  ;;  %v2101_v6 = vpop.f32.mrf.mxu0 }
 0x177   : > { %v6068_v19 = vadd.f32 %v4883_v49, %v1812_v48  ;;  %v1810_v5 = vadd.f32 %v1731_v7, %v5973_v50 }
 0x178   : > { %v4836_v3 = vpop.f32.mrf.mxu1  ;;  %v4884_v60 = vpop.f32.mrf.mxu0 }
 0x179   : > { %v6071_v8 = vadd.f32 %v2101_v6, %v1810_v5  ;;  %v1813_v25 = vadd.f32 %v4836_v3, %v5976_v45 }
 0x17a   : > { %v1734_v24 = vpop.f32.mrf.mxu1  ;;  %v2104_v30 = vpop.f32.mrf.mxu0 }
 0x17b   : > { %v6074_v41 = vadd.f32 %v4884_v60, %v1813_v25  ;;  %v1811_v46 = vadd.f32 %v1734_v24, %v5979_v42 }
 0x17c   : > { %v4839_v51 = vpop.f32.mrf.mxu1  ;;  %v4887_v10 = vpop.f32.mrf.mxu0 }
 0x17d   : > { %v6077_v57 = vadd.f32 %v2104_v30, %v1811_v46  ;;  %v1816_v4 = vadd.f32 %v4839_v51, %v5982_v43 }
 0x17e   : > { %v1747_v32 = vpop.f32.mrf.mxu1  ;;  %v2117_v50 = vpop.f32.mrf.mxu0 }
 0x17f   : > { %v6080_v55 = vadd.f32 %v4887_v10, %v1816_v4  ;;  %v1814_v14 = vadd.f32 %v1747_v32, %v5985_v0 }
 0x180   : > { %v4840_v38 = vpop.f32.mrf.mxu1  ;;  %v4888_v45 = vpop.f32.mrf.mxu0 }
 0x181   : > { %v6083_v52 = vadd.f32 %v2117_v50, %v1814_v14  ;;  %v1817_v23 = vadd.f32 %v4840_v38, %v5988_v47 }
 0x182   : > { %v1750_v37 = vpop.f32.mrf.mxu1  ;;  %v2120_v42 = vpop.f32.mrf.mxu0 }
 0x183   : > { %v6086_v53 = vadd.f32 %v4888_v45, %v1817_v23  ;;  %v1815_v22 = vadd.f32 %v1750_v37, %v5991_v11 }
 0x184   : > { %v4843_v58 = vpop.f32.mrf.mxu1  ;;  %v4891_v43 = vpop.f32.mrf.mxu0 }
 0x185   : > { %v6089_v56 = vadd.f32 %v2120_v42, %v1815_v22  ;;  %v1820_v12 = vadd.f32 %v4843_v58, %v5996_v13 }
 0x186   : > { %v1763_v28 = vpop.f32.mrf.mxu1  ;;  %v2133_v0 = vpop.f32.mrf.mxu0 }
 0x187   : > { %v6092_v63 = vadd.f32 %v4891_v43, %v1820_v12  ;;  %v1818_v39 = vadd.f32 %v1763_v28, %v5999_v15 }
 0x188   : > { %v4844_v49 = vpop.f32.mrf.mxu1  ;;  %v4892_v47 = vpop.f32.mrf.mxu0 }
 0x189   : > { %v6095_v48 = vadd.f32 %v2133_v0, %v1818_v39  ;;  %v1821_v7 = vadd.f32 %v4844_v49, %v6002_v20 }
 0x18a   : > { %v1766_v6 = vpop.f32.mrf.mxu1  ;;  %v2136_v11 = vpop.f32.mrf.mxu0 }
 0x18b   : > { %v6098_v5 = vadd.f32 %v4892_v47, %v1821_v7  ;;  %v1819_v3 = vadd.f32 %v1766_v6, %v6005_v17 }
 0x18c   : > { %v4847_v60 = vpop.f32.mrf.mxu1  ;;  %v4895_v13 = vpop.f32.mrf.mxu0 }
 0x18d   : > { %6407 = vst [vmem:[#allocation7_spill] sm:$0xff] %v6098_v5  ;;  %v6101_v25 = vadd.f32 %v2136_v11, %v1819_v3  ;;  %v1824_v24 = vadd.f32 %v4847_v60, %v6008_v36 }
 0x18e   : > { %v1779_v30 = vpop.f32.mrf.mxu1  ;;  %v2149_v15 = vpop.f32.mrf.mxu0 }
 0x18f   : > { %6408 = vst [vmem:[#allocation8_spill] sm:$0xff] %v6101_v25  ;;  %v6104_v46 = vadd.f32 %v4895_v13, %v1824_v24  ;;  %v1822_v51 = vadd.f32 %v1779_v30, %v6011_v1 }
 0x190   : > { %v4848_v10 = vpop.f32.mrf.mxu1  ;;  %v4896_v20 = vpop.f32.mrf.mxu0 }
 0x191   : > { %v6107_v4 = vadd.f32 %v2149_v15, %v1822_v51  ;;  %v1825_v32 = vadd.f32 %v4848_v10, %v6014_v26 }
 0x192   : > { %v1782_v50 = vpop.f32.mrf.mxu1  ;;  %v2152_v17 = vpop.f32.mrf.mxu0 }
 0x193   : > { %v6110_v14 = vadd.f32 %v4896_v20, %v1825_v32  ;;  %v1823_v38 = vadd.f32 %v1782_v50, %v6017_v33 }
 0x194   : > { %v4915_v45 = vpop.f32.mrf.mxu1  ;;  %v4963_v36 = vpop.f32.mrf.mxu0 }
 0x195   : > { %6409 = vst [vmem:[#allocation9_spill] sm:$0xff] %v6110_v14  ;;  %v6113_v23 = vadd.f32 %v2152_v17, %v1823_v38  ;;  %v2536_v37 = vadd.f32 %v4915_v45, %v6020_v27 }
 0x196   : > { %v2407_v42 = vpop.f32.mrf.mxu1  ;;  %v2778_v1 = vpop.f32.mrf.mxu0 }
 0x197   : > { %6410 = vst [vmem:[#allocation10_spill] sm:$0xff] %v6113_v23  ;;  %v6116_v22 = vadd.f32 %v4963_v36, %v2536_v37  ;;  %v2534_v58 = vadd.f32 %v2407_v42, %v6023_v9 }
 0x198   : > { %v6119_v43 = vpop.f32.mrf.mxu1  ;;  %v6121_v26 = vpop.f32.mrf.mxu0 }
 0x199   : > { %v6123_v12 = vadd.f32 %v2778_v1, %v2534_v58 }
 0x19a   : > { %v6125_v28 = vpop.f32.mrf.mxu1  ;;  %v6127_v33 = vpop.f32.mrf.mxu0 }
 0x19c   : > { %v4919_v0 = vpop.f32.mrf.mxu1  ;;  %v4967_v39 = vpop.f32.mrf.mxu0 }
 0x19d   : > { %v2540_v27 = vadd.f32 %v4919_v0, %v6032_v18 }
 0x19e   : > { %v2423_v49 = vpop.f32.mrf.mxu1  ;;  %v2794_v47 = vpop.f32.mrf.mxu0 }
 0x19f   : > { %v6130_v7 = vadd.f32 %v4967_v39, %v2540_v27  ;;  %v2538_v9 = vadd.f32 %v2423_v49, %v6035_v21 }
 0x1a0   : > { %v6133_v6 = vpop.f32.mrf.mxu1  ;;  %v6135_v11 = vpop.f32.mrf.mxu0 }
 0x1a1   : > { %v6137_v3 = vadd.f32 %v2794_v47, %v2538_v9 }
 0x1a2   : > { %v6139_v60 = vpop.f32.mrf.mxu1  ;;  %v6141_v13 = vpop.f32.mrf.mxu0 }
 0x1a4   : > { %v4923_v24 = vpop.f32.mrf.mxu1  ;;  %v4971_v30 = vpop.f32.mrf.mxu0 }
 0x1a5   : > { %v2544_v18 = vadd.f32 %v4923_v24, %v6044_v31 }
 0x1a6   : > { %v2439_v15 = vpop.f32.mrf.mxu1  ;;  %v2810_v51 = vpop.f32.mrf.mxu0 }
 0x1a7   : > { %v6144_v10 = vadd.f32 %v4971_v30, %v2544_v18  ;;  %v2542_v21 = vadd.f32 %v2439_v15, %v6047_v44 }
 0x1a8   : > { %v6147_v20 = vpop.f32.mrf.mxu1  ;;  %v6149_v32 = vpop.f32.mrf.mxu0 }
 0x1a9   : > { %v6151_v50 = vadd.f32 %v2810_v51, %v2542_v21 }
 0x1aa   : > { %v6153_v17 = vpop.f32.mrf.mxu1  ;;  %v6155_v38 = vpop.f32.mrf.mxu0 }
 0x1ac   : > { %v4927_v45 = vpop.f32.mrf.mxu1  ;;  %v4975_v36 = vpop.f32.mrf.mxu0 }
 0x1ad   : > { %v2548_v31 = vadd.f32 %v4927_v45, %v6056_v62 }
 0x1ae   : > { %v2455_v37 = vpop.f32.mrf.mxu1  ;;  %v2826_v42 = vpop.f32.mrf.mxu0 }
 0x1af   : > { %v6158_v1 = vadd.f32 %v4975_v36, %v2548_v31  ;;  %v2546_v44 = vadd.f32 %v2455_v37, %v6059_v40 }
 0x1b0   : > { %v6161_v58 = vpop.f32.mrf.mxu1  ;;  %v6163_v0 = vpop.f32.mrf.mxu0 }
 0x1b1   : > { %v6165_v39 = vadd.f32 %v2826_v42, %v2546_v44 }
 0x1b2   : > { %v6167_v27 = vpop.f32.mrf.mxu1  ;;  %v6169_v49 = vpop.f32.mrf.mxu0 }
 0x1b4   : > { %v4931_v47 = vpop.f32.mrf.mxu1  ;;  %v4979_v9 = vpop.f32.mrf.mxu0 }
 0x1b5   : > { %v2552_v62 = vadd.f32 %v4931_v47, %v6068_v19 }
 0x1b6   : > { %v2471_v24 = vpop.f32.mrf.mxu1  ;;  %v2842_v30 = vpop.f32.mrf.mxu0 }
 0x1b7   : > { %v6172_v18 = vadd.f32 %v4979_v9, %v2552_v62  ;;  %v2550_v40 = vadd.f32 %v2471_v24, %v6071_v8 }
 0x1b8   : > { %v6175_v15 = vpop.f32.mrf.mxu1  ;;  %v6177_v51 = vpop.f32.mrf.mxu0 }
 0x1b9   : > { %v6179_v21 = vadd.f32 %v2842_v30, %v2550_v40 }
 0x1ba   : > { %v6181_v45 = vpop.f32.mrf.mxu1  ;;  %v6183_v36 = vpop.f32.mrf.mxu0 }
 0x1bc   : > { %v4935_v31 = vpop.f32.mrf.mxu1  ;;  %v4983_v37 = vpop.f32.mrf.mxu0 }
 0x1bd   : > { %v2556_v19 = vadd.f32 %v4935_v31, %v6080_v55 }
 0x1be   : > { %v2487_v42 = vpop.f32.mrf.mxu1  ;;  %v2858_v44 = vpop.f32.mrf.mxu0 }
 0x1bf   : > { %v6186_v47 = vadd.f32 %v4983_v37, %v2556_v19  ;;  %v2554_v8 = vadd.f32 %v2487_v42, %v6083_v52 }
 0x1c0   : > { %v6189_v9 = vpop.f32.mrf.mxu1  ;;  %v6191_v62 = vpop.f32.mrf.mxu0 }
 0x1c1   : > { %6411 = vst [vmem:[#allocation11_spill] sm:$0xff] %v6191_v62  ;;  %v6193_v24 = vadd.f32 %v2858_v44, %v2554_v8 }
 0x1c2   : > { %v6195_v30 = vpop.f32.mrf.mxu1  ;;  %v6197_v40 = vpop.f32.mrf.mxu0 }
 0x1c3   : > { %6412 = vst [vmem:[#allocation12_spill] sm:$0xff] %v6193_v24  ;;  %6413 = vst [vmem:[#allocation13_spill] sm:$0xff] %v6197_v40 }
 0x1c4   : > { %v4939_v23 = vpop.f32.mrf.mxu1  ;;  %v4987_v14 = vpop.f32.mrf.mxu0 }
 0x1c5   : > { %v2560_v55 = vadd.f32 %v4939_v23, %v6092_v63 }
 0x1c6   : > { %v2503_v31 = vpop.f32.mrf.mxu1  ;;  %v2874_v25 = vpop.f32.mrf.mxu0 }
 0x1c7   : > { %v6200_v37 = vadd.f32 %v4987_v14, %v2560_v55  ;;  %v2558_v52 = vadd.f32 %v2503_v31, %v6095_v48 }
 0x1c8   : > { %v6203_v19 = vpop.f32.mrf.mxu1  ;;  %v6205_v42 = vpop.f32.mrf.mxu0 }
 0x1c9   : > { %v6207_v44 = vadd.f32 %v2874_v25, %v2558_v52 }
 0x1ca   : > { %v6209_v8 = vpop.f32.mrf.mxu1  ;;  %v6211_v5 = vpop.f32.mrf.mxu0 }
 0x1cb   : > { %6414 = vst [vmem:[#allocation14_spill] sm:$0xff] %v6207_v44  ;;  %6415 = vst [vmem:[#allocation15_spill] sm:$0xff] %v6211_v5 }
 0x1cc   : > { %v4943_v40 = vpop.f32.mrf.mxu1  ;;  %v4991_v24 = vpop.f32.mrf.mxu0 }
 0x1cd   : > { %v2564_v63 = vadd.f32 %v4943_v40, %v6104_v46  ;;  %v2537_v46 = vadd.f32 %v6119_v43, %v6026_v61 }
 0x1ce   : > { %v2519_v23 = vpop.f32.mrf.mxu1  ;;  %v2890_v62 = vpop.f32.mrf.mxu0 }
 0x1cf   : > { %v6214_v14 = vadd.f32 %v4991_v24, %v2564_v63  ;;  %v2562_v48 = vadd.f32 %v2519_v23, %v6107_v4  ;;  %v2535_v24 = vadd.f32 %v6125_v28, %v6029_v29  ;;  %v6242_v28 = vld [vmem:[%s182_s27] ss:$0 sm:$0xff] }
 0x1d0   : > { %v6217_v55 = vpop.f32.mrf.mxu1  ;;  %v6219_v25 = vpop.f32.mrf.mxu0 }
 0x1d1   : > { %6416 = vst [vmem:[#allocation16_spill] sm:$0xff] %v6214_v14  ;;  %6417 = vst [vmem:[#allocation17_spill] sm:$0xff] %v6219_v25  ;;  %v6221_v31 = vadd.f32 %v2890_v62, %v2562_v48  ;;  %v2908_v62 = vadd.f32 %v6121_v26, %v2537_v46  ;;  %v2906_v43 = vadd.f32 %v6127_v33, %v2535_v24 }
 0x1d2   : > { %v6223_v52 = vpop.f32.mrf.mxu1  ;;  %v6225_v5 = vpop.f32.mrf.mxu0 }
 0x1d3   : > { %6418 = vst [vmem:[#allocation18_spill] sm:$0xff] %v6221_v31  ;;  %6419 = vst [vmem:[#allocation19_spill] sm:$0xff] %v6223_v52 }
 0x1d4   : > { %6420 = vst [vmem:[#allocation20_spill] sm:$0xff] %v6225_v5  ;;  %v5011_v40 = vpop.f32.mrf.mxu1  ;;  %v5059_v44 = vpop.f32.mrf.mxu0 }
 0x1d5   : > { %v3277_v4 = vadd.f32 %v5011_v40, %v6116_v22  ;;  %v2541_v22 = vadd.f32 %v6133_v6, %v6038_v34 }
 0x1d6   : > { %v3148_v63 = vpop.f32.mrf.mxu1  ;;  %v3518_v23 = vpop.f32.mrf.mxu0 }
 0x1d7   : > { %v3275_v48 = vadd.f32 %v3148_v63, %v6123_v12  ;;  %v3647_v31 = vadd.f32 %v5059_v44, %v3277_v4  ;;  %v2539_v12 = vadd.f32 %v6139_v60, %v6041_v59  ;;  %v2912_v6 = vadd.f32 %v6135_v11, %v2541_v22 }
 0x1d8   : > { %v5012_v5 = vpop.f32.mrf.mxu1  ;;  %v5060_v61 = vpop.f32.mrf.mxu0 }
 0x1d9   : > { %v3278_v29 = vadd.f32 %v5012_v5, %v2908_v62  ;;  %v3645_v46 = vadd.f32 %v3518_v23, %v3275_v48  ;;  %v3750_v33 = vadd.f32 %v6242_v28, %v3647_v31  ;;  %v2910_v31 = vadd.f32 %v6141_v13, %v2539_v12 }
 0x1da   : > { %v3151_v40 = vpop.f32.mrf.mxu1  ;;  %v3521_v26 = vpop.f32.mrf.mxu0  ;;  %v2543_v13 = vadd.f32 %v6153_v17, %v6053_v16 }
 0x1db   : > { %v3648_v25 = vadd.f32 %v5060_v61, %v3278_v29  ;;  %v3276_v14 = vadd.f32 %v3151_v40, %v2906_v43  ;;  %v3748_v23 = vadd.f32 %v6242_v28, %v3645_v46 }
 0x1dc   : > { %v5015_v63 = vpop.f32.mrf.mxu1  ;;  %v5063_v52 = vpop.f32.mrf.mxu0 }
 0x1dd   : > { %v3751_v5 = vadd.f32 %v6242_v28, %v3648_v25  ;;  %v3646_v44 = vadd.f32 %v3521_v26, %v3276_v14  ;;  %v3281_v34 = vadd.f32 %v5015_v63, %v6130_v7  ;;  %v2545_v25 = vadd.f32 %v6147_v20, %v6050_v35 }
 0x1de   : > { %v3164_v24 = vpop.f32.mrf.mxu1  ;;  %v3534_v4 = vpop.f32.mrf.mxu0 }
 0x1df   : > { %v4346_v62 = vpack.c.bf16 %v3751_v5, %v3750_v33  ;;  %v3749_v48 = vadd.f32 %v6242_v28, %v3646_v44  ;;  %v3279_v59 = vadd.f32 %v3164_v24, %v6137_v3  ;;  %v3651_v11 = vadd.f32 %v5063_v52, %v3281_v34 }
 0x1e0   : > { %v5016_v60 = vpop.f32.mrf.mxu1  ;;  %v5064_v61 = vpop.f32.mrf.mxu0  ;;  %v2916_v35 = vadd.f32 %v6149_v32, %v2545_v25  ;;  %v2549_v32 = vadd.f32 %v6161_v58, %v6062_v54 }
 0x1e1   : > { %4426 = vst [vmem:[%s6256_s28 + $0x8] sm:$0xff] %v4346_v62   ;;  %v4341_v7 = vpack.c.bf16 %v3749_v48, %v3748_v23  ;;  %v3282_v14 = vadd.f32 %v5016_v60, %v2912_v6  ;;  %v3649_v22 = vadd.f32 %v3534_v4, %v3279_v59  ;;  %v3754_v12 = vadd.f32 %v6242_v28, %v3651_v11 }
 0x1e2   : > { %v3167_v43 = vpop.f32.mrf.mxu1  ;;  %v3537_v29 = vpop.f32.mrf.mxu0  ;;  %v2914_v4 = vadd.f32 %v6155_v38, %v2543_v13  ;;  %v2920_v54 = vadd.f32 %v6163_v0, %v2549_v32  ;;  %v2553_v0 = vadd.f32 %v6175_v15, %v6074_v41 }
 0x1e3   : > { %4342 = vst [vmem:[%s6256_s28] sm:$0xff] %v4341_v7   ;;  %v3652_v3 = vadd.f32 %v5064_v61, %v3282_v14  ;;  %v3280_v40 = vadd.f32 %v3167_v43, %v2910_v31  ;;  %v3752_v44 = vadd.f32 %v6242_v28, %v3649_v22 }
 0x1e4   : > { %v5019_v26 = vpop.f32.mrf.mxu1  ;;  %v5067_v46 = vpop.f32.mrf.mxu0  ;;  %v2924_v41 = vadd.f32 %v6177_v51, %v2553_v0  ;;  %v2557_v51 = vadd.f32 %v6189_v9, %v6086_v53  ;;  %v6421_v53 = vld [vmem:[#allocation11_spill] sm:$0xff] }
 0x1e5   : > { %v3755_v52 = vadd.f32 %v6242_v28, %v3652_v3  ;;  %v3650_v63 = vadd.f32 %v3537_v29, %v3280_v40  ;;  %v3285_v33 = vadd.f32 %v5019_v26, %v6144_v10 }
 0x1e6   : > { %v3180_v20 = vpop.f32.mrf.mxu1  ;;  %v3550_v5 = vpop.f32.mrf.mxu0  ;;  %v2928_v9 = vadd.f32 %v6421_v53, %v2557_v51 }
 0x1e7   : > { %v4356_v34 = vpack.c.bf16 %v3755_v52, %v3754_v12  ;;  %v3753_v16 = vadd.f32 %v6242_v28, %v3650_v63  ;;  %v3283_v17 = vadd.f32 %v3180_v20, %v6151_v50  ;;  %v3655_v62 = vadd.f32 %v5067_v46, %v3285_v33 }
 0x1e8   : > { %v5020_v6 = vpop.f32.mrf.mxu1  ;;  %v5068_v24 = vpop.f32.mrf.mxu0  ;;  %v2547_v50 = vadd.f32 %v6167_v27, %v6065_v2 }
 0x1e9   : > { %4428 = vst [vmem:[%s6256_s28 + $0x18] sm:$0xff] %v4356_v34   ;;  %v4351_v23 = vpack.c.bf16 %v3753_v16, %v3752_v44  ;;  %v3286_v10 = vadd.f32 %v5020_v6, %v2916_v35  ;;  %v3653_v60 = vadd.f32 %v3550_v5, %v3283_v17  ;;  %v3758_v38 = vadd.f32 %v6242_v28, %v3655_v62 }
 0x1ea   : > { %v3183_v48 = vpop.f32.mrf.mxu1  ;;  %v3553_v59 = vpop.f32.mrf.mxu0  ;;  %v2918_v26 = vadd.f32 %v6169_v49, %v2547_v50 }
 0x1eb   : > { %4427 = vst [vmem:[%s6256_s28 + $0x10] sm:$0xff] %v4351_v23   ;;  %v3656_v61 = vadd.f32 %v5068_v24, %v3286_v10  ;;  %v3284_v31 = vadd.f32 %v3183_v48, %v2914_v4  ;;  %v3756_v22 = vadd.f32 %v6242_v28, %v3653_v60 }
 0x1ec   : > { %v5023_v7 = vpop.f32.mrf.mxu1  ;;  %v5071_v11 = vpop.f32.mrf.mxu0 }
 0x1ed   : > { %v3759_v14 = vadd.f32 %v6242_v28, %v3656_v61  ;;  %v3654_v25 = vadd.f32 %v3553_v59, %v3284_v31  ;;  %v3289_v43 = vadd.f32 %v5023_v7, %v6158_v1 }
 0x1ee   : > { %v3196_v58 = vpop.f32.mrf.mxu1  ;;  %v3566_v29 = vpop.f32.mrf.mxu0 }
 0x1ef   : > { %v4366_v3 = vpack.c.bf16 %v3759_v14, %v3758_v38  ;;  %v3757_v2 = vadd.f32 %v6242_v28, %v3654_v25  ;;  %v3287_v27 = vadd.f32 %v3196_v58, %v6165_v39  ;;  %v3659_v12 = vadd.f32 %v5071_v11, %v3289_v43 }
 0x1f0   : > { %v5024_v40 = vpop.f32.mrf.mxu1  ;;  %v5072_v13 = vpop.f32.mrf.mxu0  ;;  %v2551_v39 = vadd.f32 %v6181_v45, %v6077_v57 }
 0x1f1   : > { %4430 = vst [vmem:[%s6256_s28 + $0x28] sm:$0xff] %v4366_v3   ;;  %v4361_v46 = vpack.c.bf16 %v3757_v2, %v3756_v22  ;;  %v3290_v1 = vadd.f32 %v5024_v40, %v2920_v54  ;;  %v3657_v33 = vadd.f32 %v3566_v29, %v3287_v27  ;;  %v3762_v49 = vadd.f32 %v6242_v28, %v3659_v12  ;;  %v6423_v27 = vld [vmem:[#allocation13_spill] sm:$0xff] }
 0x1f2   : > { %v3199_v52 = vpop.f32.mrf.mxu1  ;;  %v3569_v63 = vpop.f32.mrf.mxu0  ;;  %v2922_v10 = vadd.f32 %v6183_v36, %v2551_v39 }
 0x1f3   : > { %4429 = vst [vmem:[%s6256_s28 + $0x20] sm:$0xff] %v4361_v46   ;;  %v3660_v35 = vadd.f32 %v5072_v13, %v3290_v1  ;;  %v3288_v20 = vadd.f32 %v3199_v52, %v2918_v26  ;;  %v3760_v24 = vadd.f32 %v6242_v28, %v3657_v33  ;;  %v6424_v46 = vld [vmem:[#allocation7_spill] sm:$0xff] }
 0x1f4   : > { %v5027_v5 = vpop.f32.mrf.mxu1  ;;  %v5075_v44 = vpop.f32.mrf.mxu0  ;;  %v2561_v12 = vadd.f32 %v6203_v19, %v6424_v46 }
 0x1f5   : > { %v3763_v34 = vadd.f32 %v6242_v28, %v3660_v35  ;;  %v3658_v16 = vadd.f32 %v3569_v63, %v3288_v20  ;;  %v3293_v17 = vadd.f32 %v5027_v5, %v6172_v18  ;;  %v6425_v35 = vld [vmem:[#allocation8_spill] sm:$0xff] }
 0x1f6   : > { %v3212_v15 = vpop.f32.mrf.mxu1  ;;  %v3582_v6 = vpop.f32.mrf.mxu0  ;;  %v2559_v20 = vadd.f32 %v6209_v8, %v6425_v35  ;;  %v2932_v19 = vadd.f32 %v6205_v42, %v2561_v12 }
 0x1f7   : > { %v4376_v4 = vpack.c.bf16 %v3763_v34, %v3762_v49  ;;  %v3761_v57 = vadd.f32 %v6242_v28, %v3658_v16  ;;  %v3291_v45 = vadd.f32 %v3212_v15, %v6179_v21  ;;  %v3663_v48 = vadd.f32 %v5075_v44, %v3293_v17 }
 0x1f8   : > { %v5028_v23 = vpop.f32.mrf.mxu1  ;;  %v5076_v62 = vpop.f32.mrf.mxu0  ;;  %v2555_v21 = vadd.f32 %v6195_v30, %v6089_v56  ;;  %v6422_v30 = vld [vmem:[#allocation12_spill] sm:$0xff] }
 0x1f9   : > { %4432 = vst [vmem:[%s6256_s28 + $0x38] sm:$0xff] %v4376_v4   ;;  %v4371_v32 = vpack.c.bf16 %v3761_v57, %v3760_v24  ;;  %v3294_v18 = vadd.f32 %v5028_v23, %v2924_v41  ;;  %v3661_v61 = vadd.f32 %v3582_v6, %v3291_v45  ;;  %v3766_v36 = vadd.f32 %v6242_v28, %v3663_v48  ;;  %v6426_v24 = vld [vmem:[#allocation14_spill] sm:$0xff]  ;;  %v6427_v23 = vld [vmem:[#allocation15_spill] sm:$0xff]  ;;  %v6428_v48 = vld [vmem:[#allocation9_spill] sm:$0xff] }
 0x1fa   : > { %v3215_v59 = vpop.f32.mrf.mxu1  ;;  %v3585_v60 = vpop.f32.mrf.mxu0  ;;  %v2926_v40 = vadd.f32 %v6423_v27, %v2555_v21  ;;  %v2565_v42 = vadd.f32 %v6217_v55, %v6428_v48  ;;  %v6432_v55 = vld [vmem:[#allocation17_spill] sm:$0xff]  ;;  %v6434_v27 = vld [vmem:[#allocation20_spill] sm:$0xff] }
 0x1fb   : > { %4431 = vst [vmem:[%s6256_s28 + $0x30] sm:$0xff] %v4371_v32   ;;  %v3664_v31 = vadd.f32 %v5076_v62, %v3294_v18  ;;  %v3292_v50 = vadd.f32 %v3215_v59, %v2922_v10  ;;  %v3764_v58 = vadd.f32 %v6242_v28, %v3661_v61  ;;  %v2930_v62 = vadd.f32 %v6427_v23, %v2559_v20 }
 0x1fc   : > { %v5031_v7 = vpop.f32.mrf.mxu1  ;;  %v5079_v11 = vpop.f32.mrf.mxu0 }
 0x1fd   : > { %v3767_v38 = vadd.f32 %v6242_v28, %v3664_v31  ;;  %v3662_v14 = vadd.f32 %v3585_v60, %v3292_v50  ;;  %v3297_v25 = vadd.f32 %v5031_v7, %v6186_v47  ;;  %v6429_v31 = vld [vmem:[#allocation10_spill] sm:$0xff]  ;;  %v6430_v50 = vld [vmem:[#allocation19_spill] sm:$0xff] }
 0x1fe   : > { %v3228_v43 = vpop.f32.mrf.mxu1  ;;  %v3598_v54 = vpop.f32.mrf.mxu0  ;;  %v2563_v21 = vadd.f32 %v6430_v50, %v6429_v31 }
 0x1ff   : > { %v4386_v29 = vpack.c.bf16 %v3767_v38, %v3766_v36  ;;  %v3765_v56 = vadd.f32 %v6242_v28, %v3662_v14  ;;  %v3295_v22 = vadd.f32 %v3228_v43, %v6422_v30  ;;  %v3667_v26 = vadd.f32 %v5079_v11, %v3297_v25  ;;  %v6431_v25 = vld [vmem:[#allocation16_spill] sm:$0xff]  ;;  %v6433_v30 = vld [vmem:[#allocation18_spill] sm:$0xff] }
 0x200   : > { %v5032_v3 = vpop.f32.mrf.mxu1  ;;  %v5080_v2 = vpop.f32.mrf.mxu0 }
 0x201   : > { %4434 = vst [vmem:[%s6256_s28 + $0x48] sm:$0xff] %v4386_v29   ;;  %v4381_v13 = vpack.c.bf16 %v3765_v56, %v3764_v58  ;;  %v3298_v47 = vadd.f32 %v5032_v3, %v2928_v9  ;;  %v3665_v52 = vadd.f32 %v3598_v54, %v3295_v22  ;;  %v3770_v44 = vadd.f32 %v6242_v28, %v3667_v26 }
 0x202   : > { %v3231_v1 = vpop.f32.mrf.mxu1  ;;  %v3601_v0 = vpop.f32.mrf.mxu0  ;;  %v2936_v9 = vadd.f32 %v6432_v55, %v2565_v42 }
 0x203   : > { %4433 = vst [vmem:[%s6256_s28 + $0x40] sm:$0xff] %v4381_v13   ;;  %v3668_v63 = vadd.f32 %v5080_v2, %v3298_v47  ;;  %v3296_v33 = vadd.f32 %v3231_v1, %v2926_v40  ;;  %v3768_v15 = vadd.f32 %v6242_v28, %v3665_v52  ;;  %v2934_v40 = vadd.f32 %v6434_v27, %v2563_v21 }
 0x204   : > { %v5035_v39 = vpop.f32.mrf.mxu1  ;;  %v5083_v5 = vpop.f32.mrf.mxu0 }
 0x205   : > { %v3771_v49 = vadd.f32 %v6242_v28, %v3668_v63  ;;  %v3666_v34 = vadd.f32 %v3601_v0, %v3296_v33  ;;  %v3301_v16 = vadd.f32 %v5035_v39, %v6200_v37 }
 0x206   : > { %v3244_v17 = vpop.f32.mrf.mxu1  ;;  %v3614_v41 = vpop.f32.mrf.mxu0 }
 0x207   : > { %v4396_v6 = vpack.c.bf16 %v3771_v49, %v3770_v44  ;;  %v3769_v8 = vadd.f32 %v6242_v28, %v3666_v34  ;;  %v3299_v4 = vadd.f32 %v3244_v17, %v6426_v24  ;;  %v3671_v32 = vadd.f32 %v5083_v5, %v3301_v16 }
 0x208   : > { %v5036_v57 = vpop.f32.mrf.mxu1  ;;  %v5084_v45 = vpop.f32.mrf.mxu0 }
 0x209   : > { %4436 = vst [vmem:[%s6256_s28 + $0x58] sm:$0xff] %v4396_v6   ;;  %v4391_v10 = vpack.c.bf16 %v3769_v8, %v3768_v15  ;;  %v3302_v37 = vadd.f32 %v5036_v57, %v2932_v19  ;;  %v3669_v59 = vadd.f32 %v3614_v41, %v3299_v4  ;;  %v3774_v36 = vadd.f32 %v6242_v28, %v3671_v32 }
 0x20a   : > { %v3247_v18 = vpop.f32.mrf.mxu1  ;;  %v3617_v51 = vpop.f32.mrf.mxu0 }
 0x20b   : > { %4435 = vst [vmem:[%s6256_s28 + $0x50] sm:$0xff] %v4391_v10   ;;  %v3672_v60 = vadd.f32 %v5084_v45, %v3302_v37  ;;  %v3300_v61 = vadd.f32 %v3247_v18, %v2930_v62  ;;  %v3772_v58 = vadd.f32 %v6242_v28, %v3669_v59 }
 0x20c   : > { %v5039_v7 = vpop.f32.mrf.mxu1  ;;  %v5087_v11 = vpop.f32.mrf.mxu0 }
 0x20d   : > { %v3775_v38 = vadd.f32 %v6242_v28, %v3672_v60  ;;  %v3670_v14 = vadd.f32 %v3617_v51, %v3300_v61  ;;  %v3305_v53 = vadd.f32 %v5039_v7, %v6431_v25 }
 0x20e   : > { %v3260_v43 = vpop.f32.mrf.mxu1  ;;  %v3630_v54 = vpop.f32.mrf.mxu0 }
 0x20f   : > { %v4406_v29 = vpack.c.bf16 %v3775_v38, %v3774_v36  ;;  %v3773_v56 = vadd.f32 %v6242_v28, %v3670_v14  ;;  %v3303_v22 = vadd.f32 %v3260_v43, %v6433_v30  ;;  %v3675_v26 = vadd.f32 %v5087_v11, %v3305_v53 }
 0x210   : > { %v5040_v3 = vpop.f32.mrf.mxu1  ;;  %v5088_v2 = vpop.f32.mrf.mxu0 }
 0x211   : > { %4438 = vst [vmem:[%s6256_s28 + $0x68] sm:$0xff] %v4406_v29   ;;  %v4401_v13 = vpack.c.bf16 %v3773_v56, %v3772_v58  ;;  %v3306_v47 = vadd.f32 %v5040_v3, %v2936_v9  ;;  %v3673_v12 = vadd.f32 %v3630_v54, %v3303_v22  ;;  %v3778_v63 = vadd.f32 %v6242_v28, %v3675_v26 }
 0x212   : > { %v3263_v46 = vpop.f32.mrf.mxu1  ;;  %v3633_v52 = vpop.f32.mrf.mxu0 }
 0x213   : > { %4437 = vst [vmem:[%s6256_s28 + $0x60] sm:$0xff] %v4401_v13   ;;  %v3676_v1 = vadd.f32 %v5088_v2, %v3306_v47  ;;  %v3304_v0 = vadd.f32 %v3263_v46, %v2934_v40  ;;  %v3776_v20 = vadd.f32 %v6242_v28, %v3673_v12 }
 0x215   : > { %v3779_v33 = vadd.f32 %v6242_v28, %v3676_v1  ;;  %v3674_v35 = vadd.f32 %v3633_v52, %v3304_v0 }
 0x217   : > { %v4416_v39 = vpack.c.bf16 %v3779_v33, %v3778_v63  ;;  %v3777_v5 = vadd.f32 %v6242_v28, %v3674_v35 }
 0x219   : > { %4440 = vst [vmem:[%s6256_s28 + $0x78] sm:$0xff] %v4416_v39   ;;  %v4411_v44 = vpack.c.bf16 %v3777_v5, %v3776_v20 }
 0x21b   : > { %4439 = vst [vmem:[%s6256_s28 + $0x70] sm:$0xff] %v4411_v44  }
 0x21c   : > { %5241 = shalt.err (!%p5238_p3)
}
 0x21d   : > { %s5242_s19 = scalar_lea.hbm %s6353_s8, 2048  ;;  %s5246_s25 = scalar_lea.hbm %s6404_s3, 4096 }
 0x21e   : > { %p5243_p4 = scmp.ne.s32.totalorder %s6353_s8, %s5242_s19  ;;  %p5247_p9 = scmp.lt.s32.totalorder %s6353_s8, %s6404_s3 }
 0x21f   : > { %p5248_p10 = scmp.lt.s32.totalorder %s5246_s25, %s5242_s19 }
 0x220   : > { %p5244_p7 = pnand %p5243_p4, %p5351_p5 }
 0x221   : > { %p5249_p11 = por %p5248_p10, %p5247_p9 }
 0x222   : > { %p5245_p8 = pneg %p5244_p7 }
 0x224   : > { %p5250_p12 = pnand %p5249_p11, %p5245_p8 }
 0x226   : > { %5253 = shalt.err (!%p5250_p12)
}
 0x227   : > { %s5291_s29 = smov 64   ;;  %s5292_s30 = smov 4  }
 0x228   : > { %5106 = dma.vmem_to_hbm [thread:$0]  (%p5351_p5), %s6355_s5, 2048, %s6353_s8, %s6361_s16, %s5291_s29, %s5291_s29, %s5292_s30  }
 0x229 PF: > { %p5112_p13 = scmp.ge.s32.totalorder %s5288_s15, 2  ;;  %s3969_s28 = sand.u32 1, %s5276_s12  }
 0x22a   : > { %s3970_s4 = scalar_lea.sflag [#allocation5], %s3969_s28 }
 0x22b   : > { %p5109_p0 = pnand %p5112_p13, %p5355_p6 }
 0x22d   : > { %p5110_p1 = pneg %p5109_p0 }
 0x22f   : > { %5271 = dma.done.wait (%p5110_p1), %s3970_s4, 2048  }
 0x230   : > { %5273 = vsyncadd (%p5110_p1), %s3970_s4, 4294965248  ;;  %p13_p2 = scmp.ge.s32.totalorder %s5338_s18, 4   ;;  %s6435_s12 = smov %s5280_s13 }
 0x231   : > { %s6436_s13 = smov %s5284_s14  ;;  %s6437_s14 = smov %s5349_s21 }
 0x232   : > { %s6438_s15 = smov %s5338_s18  ;;  %15 = sbr.rel (!%p13_p2) target bundleno = 3 (0x3), region = 80 }
 0x237   :  { %3975 = vsyncpa [#allocation5], 1 }
 0x238   :  { %3977 = vsyncpa [#allocation5 + $0x1], 1 }

</bundles_post_ra>
